<compile_context>
chip_gen: v6e
topology: v6e:2x2x1
jax: 0.10.0
libtpu: 0.0.40
codegen_flags: <defaults>
</compile_context>

<pallas_src>
import functools
import math

import jax
import jax.numpy as jnp
from jax import lax
from jax.experimental import pallas as pl
from jax.experimental.pallas import tpu as pltpu


_INV_SQRT2 = 1.0 / math.sqrt(2.0)
_TANH_C = math.sqrt(2.0 / math.pi)


def _gelu(x, approximate):
    if approximate:
        # tanh form: transcendental goes to the EUP slot (frees VALU on v6e/v7x).
        return 0.5 * x * (1.0 + jnp.tanh(_TANH_C * (x + 0.044715 * x * x * x)))
    # nn.GELU() default: exact erf.
    return 0.5 * x * (1.0 + lax.erf(x * _INV_SQRT2))


def mlp_kernel(x_ref, w1_ref, b1_ref, w2_ref, b2_ref, o_ref, acc_ref, xb_ref,
               *, approximate_gelu):
    # x_ref:  (tm, E)  f32      w1_ref: (E, th) bf16   b1_ref: (1, th) f32
    # w2_ref: (th, E)  bf16     b2_ref: (1, E)  f32    o_ref:  (tm, E)
    # acc_ref: (tm, E) f32 scratch;  xb_ref: (tm, E) bf16 scratch
    j = pl.program_id(1)

    @pl.when(j == 0)
    def _():
        acc_ref[...] = jnp.zeros_like(acc_ref)
        # Cast the f32 input tile to bf16 once per row tile; reused across j.
        xb_ref[...] = x_ref[...].astype(jnp.bfloat16)

    # fc (partial over the H tile): x @ W1[:, j] + b1[j]   (bf16 MXU, f32 acc)
    h = jnp.dot(xb_ref[...], w1_ref[...], preferred_element_type=jnp.float32)
    h = h + b1_ref[...]

    # dropout (identity, eval) -> GELU in f32
    h = _gelu(h, approximate_gelu)

    # fc2 partial: accumulate h @ W2[j, :] in f32
    acc_ref[...] += jnp.dot(h.astype(w2_ref.dtype), w2_ref[...],
                            preferred_element_type=jnp.float32)

    @pl.when(j == pl.num_programs(1) - 1)
    def _():
        # + b2, dropout (identity, eval), final cast + store (lane-dense)
        o_ref[...] = (acc_ref[...] + b2_ref[...]).astype(o_ref.dtype)


def _vmem_capacity_bytes():
    try:
        return int(pltpu.get_tpu_info().vmem_capacity_bytes)
    except Exception:
        return 64 * 1024 * 1024  # conservative: v7x per-TensorCore capacity


def _vmem_estimate_bytes(tm, E, H, th, out_bytes):
    bf16, f32 = 2, 4
    x_in = 2 * tm * E * f32           # double-buffered f32 input tile
    x_bf = tm * E * bf16              # cached bf16 cast (scratch)
    w1 = 2 * E * th * bf16            # double-buffered W1 tile
    w2 = 2 * th * E * bf16            # double-buffered W2 tile
    b1 = 2 * max(th, 128) * f32
    b2 = 2 * max(E, 128) * f32
    out_t = 2 * tm * E * out_bytes    # double-buffered output tile
    acc = tm * E * f32                # accumulator scratch
    hidden = 2 * tm * th * f32        # h + GELU temporaries (compiler scratch)
    return x_in + x_bf + w1 + w2 + b1 + b2 + out_t + acc + hidden


def _choose_tiles(M, E, H, budget, tm_cap, out_bytes):
    tm_cands = [c for c in (512, 256, 128, 64, 32, 16) if c <= tm_cap] or [16]
    th_cands = [H] + [d for d in (8192, 4096, 2048, 1024, 512, 256, 128)
                      if d < H and H % d == 0]

    def best_th(tm):
        for th in th_cands:
            if _vmem_estimate_bytes(tm, E, H, th, out_bytes) <= budget:
                return th
        return None

    feasible = [(tm, best_th(tm)) for tm in tm_cands]
    feasible = [(tm, th) for tm, th in feasible if th is not None]
    if not feasible:
        return tm_cands[-1], th_cands[-1]  # best effort; vmem_limit still clamped
    # Prefer the largest tm that keeps >=2 row-grid steps (v7x megacore);
    # otherwise the smallest feasible tm (M is tiny anyway).
    for tm, th in feasible:
        if pl.cdiv(max(M, 1), tm) >= 2:
            return tm, th
    return feasible[-1]


def _build_mlp_call(M, E, H, tm, th, out_dtype, x_bytes, approximate_gelu,
                    capacity):
    out_bytes = jnp.dtype(out_dtype).itemsize
    est = _vmem_estimate_bytes(tm, E, H, th, out_bytes)
    vmem_limit = min(max(int(1.5 * est), 32 * 1024 * 1024),
                     capacity - 8 * 1024 * 1024)

    cost = pl.CostEstimate(
        flops=4 * M * E * H,                         # two (M,E,H) matmuls
        transcendentals=M * H,                       # erf/tanh on hidden
        bytes_accessed=(M * E * (x_bytes + out_bytes)
                        + 2 * E * H * 2              # W1, W2 bf16
                        + (H + E) * 4),              # biases f32
    )

    kernel = functools.partial(mlp_kernel, approximate_gelu=approximate_gelu)
    return pl.pallas_call(
        kernel,
        out_shape=jax.ShapeDtypeStruct((M, E), out_dtype),
        grid_spec=pltpu.PrefetchScalarGridSpec(
            num_scalar_prefetch=0,
            grid=(M // tm, H // th),                 # rows parallel, H reduction last
            in_specs=[
                pl.BlockSpec((tm, E), lambda i, j: (i, 0)),   # x (f32, streamed)
                pl.BlockSpec((E, th), lambda i, j: (0, j)),   # W1 column tile
                pl.BlockSpec((1, th), lambda i, j: (0, j)),   # b1 tile
                pl.BlockSpec((th, E), lambda i, j: (j, 0)),   # W2 row tile
                pl.BlockSpec((1, E), lambda i, j: (0, 0)),    # b2
            ],
            out_specs=pl.BlockSpec((tm, E), lambda i, j: (i, 0)),
            scratch_shapes=[pltpu.VMEM((tm, E), jnp.float32),    # f32 accumulator
                            pltpu.VMEM((tm, E), jnp.bfloat16)],  # cached bf16 x
        ),
        compiler_params=pltpu.CompilerParams(
            dimension_semantics=("parallel", "arbitrary"),
            vmem_limit_bytes=vmem_limit,
        ),
        cost_estimate=cost,
    )


def prepare_mlp_params(w1, b1, w2, b2):
    """One-time parameter prep (outside the per-call path): weights -> bf16,
    biases -> (1, N) f32.  Weights stored (in, out) so the kernel computes
    plain `x @ W + b` on the MXU."""
    E, H = w1.shape
    return (w1.astype(jnp.bfloat16),
            b1.reshape(1, H).astype(jnp.float32),
            w2.astype(jnp.bfloat16),
            b2.reshape(1, E).astype(jnp.float32))


def mlp_forward(x, w1_bf, b1_2d, w2_bf, b2_2d, *, out_dtype=None,
                approximate_gelu=False, tm_cap=512):
    """x: (M, E) f32 (or bf16).  Params from prepare_mlp_params."""
    M, E = x.shape
    H = w1_bf.shape[1]
    out_dtype = x.dtype if out_dtype is None else out_dtype
    out_bytes = jnp.dtype(out_dtype).itemsize

    capacity = _vmem_capacity_bytes()
    budget = max(capacity - 16 * 1024 * 1024, capacity // 2)
    tm, th = _choose_tiles(M, E, H, budget, tm_cap, out_bytes)

    # Pad the token axis to a multiple of tm: keeps stores lane/sublane dense
    # and satisfies the (8,128) block-shape rule for arbitrary M.
    m_pad = tm * pl.cdiv(M, tm)
    x_in = x if m_pad == M else jnp.pad(x, ((0, m_pad - M), (0, 0)))

    call = _build_mlp_call(m_pad, E, H, tm, th, out_dtype,
                           jnp.dtype(x.dtype).itemsize, approximate_gelu,
                           capacity)
    out = call(x_in, w1_bf, b1_2d, w2_bf, b2_2d)
    return out if m_pad == M else out[:M]


def init_linear_params(key, fan_in, fan_out, dtype=jnp.float32):
    """Match nn.Linear init: U(-1/sqrt(fan_in), 1/sqrt(fan_in)); weight already
    transposed to (fan_in, fan_out)."""
    kw, kb = jax.random.split(key)
    bound = 1.0 / math.sqrt(fan_in)
    w = jax.random.uniform(kw, (fan_in, fan_out), dtype, -bound, bound)
    b = jax.random.uniform(kb, (fan_out,), dtype, -bound, bound)
    return w, b


def reference_mlp(x, w1, b1, w2, b2):
    # Numerics-matched pure-JAX reference: bf16 MXU inputs, f32 accumulation,
    # bias + exact erf GELU in f32.
    xb = x.astype(jnp.bfloat16)
    w1b = w1.astype(jnp.bfloat16)
    w2b = w2.astype(jnp.bfloat16)
    h = jnp.dot(xb, w1b, preferred_element_type=jnp.float32) + b1
    h = 0.5 * h * (1.0 + lax.erf(h * _INV_SQRT2))
    o = jnp.dot(h.astype(jnp.bfloat16), w2b,
                preferred_element_type=jnp.float32) + b2
    return o


if __name__ == "__main__":
    # Small shapes consistent with the module: embeddings=128 (lane-dense),
    # mlp_ratio=4, batch=2, seq=128 -> tokens M=256, hidden H=512.
    B, S, E, RATIO = 2, 128, 128, 4
    H = E * RATIO

    key = jax.random.PRNGKey(0)
    kx, k1, k2 = jax.random.split(key, 3)

    x = jax.random.normal(kx, (B, S, E), jnp.float32)
    w1, b1 = init_linear_params(k1, E, H)   # fc:  Linear(E, H)
    w2, b2 = init_linear_params(k2, H, E)   # fc2: Linear(H, E)

    params = prepare_mlp_params(w1, b1, w2, b2)   # one-time bf16 cast

    x2d = x.reshape(B * S, E)                     # tokens flattened to (M, E)
    out2d = mlp_forward(x2d, *params)
    out = out2d.reshape(B, S, E)
    jax.block_until_ready(out)

    ref = reference_mlp(x2d, w1, b1, w2, b2).reshape(B, S, E)
    assert jnp.allclose(out, ref, atol=2e-3, rtol=2e-3), "mismatch vs reference"

    print("KERNEL_OK")
</pallas_src>

<mosaic_0001>
module attributes {stable_mosaic.version = 11 : i64} {
  func.func @mlp_kernel(%arg0: i32, %arg1: i32, %arg2: memref<128x128xf32, #tpu.memory_space<vmem>>, %arg3: memref<128x512xbf16, #tpu.memory_space<vmem>>, %arg4: memref<1x512xf32, #tpu.memory_space<vmem>>, %arg5: memref<512x128xbf16, #tpu.memory_space<vmem>>, %arg6: memref<1x128xf32, #tpu.memory_space<vmem>>, %arg7: memref<128x128xf32, #tpu.memory_space<vmem>>, %arg8: memref<128x128xf32, #tpu.memory_space<vmem>>, %arg9: memref<128x128xbf16, #tpu.memory_space<vmem>>) attributes {dimension_semantics = [#tpu.dimension_semantics<parallel>, #tpu.dimension_semantics<arbitrary>], iteration_bounds = array<i64: 2, 1>, scalar_prefetch = 0 : i64, scratch_operands = 2 : i64, tpu.core_type = #tpu.core_type<tc>, window_params = [{transform_indices = @transform_0, window_bounds = array<i64: 128, 128>}, {transform_indices = @transform_1, window_bounds = array<i64: 128, 512>}, {transform_indices = @transform_2, window_bounds = array<i64: 1, 512>}, {transform_indices = @transform_3, window_bounds = array<i64: 512, 128>}, {pipeline_mode = #tpu.pipeline_mode<synchronous>, transform_indices = @transform_4, window_bounds = array<i64: 1, 128>}, {transform_indices = @transform_5, window_bounds = array<i64: 128, 128>}]} {
    %c0_i32 = arith.constant 0 : i32
    %0 = arith.cmpi eq, %arg1, %c0_i32 : i32
    %1 = arith.extui %0 : i1 to i32
    %c0_i32_0 = arith.constant 0 : i32
    %2 = arith.cmpi ne, %1, %c0_i32_0 : i32
    scf.if %2 {
      %cst_18 = arith.constant 0.000000e+00 : f32
      %26 = vector.broadcast %cst_18 : f32 to vector<128x128xf32>
      %c0_19 = arith.constant 0 : index
      %c0_20 = arith.constant 0 : index
      %27 = vector.load %arg8[%c0_19, %c0_20] : memref<128x128xf32, #tpu.memory_space<vmem>>, vector<128x128xf32>
      tpu.vector_store %arg8[%c0_19, %c0_20], %26 {strides = array<i32>} : memref<128x128xf32, #tpu.memory_space<vmem>>, vector<128x128xf32>,
      %c0_21 = arith.constant 0 : index
      %c0_22 = arith.constant 0 : index
      %28 = vector.load %arg2[%c0_21, %c0_22] : memref<128x128xf32, #tpu.memory_space<vmem>>, vector<128x128xf32>
      %29 = arith.truncf %28 : vector<128x128xf32> to vector<128x128xbf16>
      %c0_23 = arith.constant 0 : index
      %c0_24 = arith.constant 0 : index
      %30 = vector.load %arg9[%c0_23, %c0_24] : memref<128x128xbf16, #tpu.memory_space<vmem>>, vector<128x128xbf16>
      tpu.vector_store %arg9[%c0_23, %c0_24], %29 {strides = array<i32>} : memref<128x128xbf16, #tpu.memory_space<vmem>>, vector<128x128xbf16>,
    } else {
    }
    %c0 = arith.constant 0 : index
    %c0_1 = arith.constant 0 : index
    %3 = vector.load %arg9[%c0, %c0_1] : memref<128x128xbf16, #tpu.memory_space<vmem>>, vector<128x128xbf16>
    %c0_2 = arith.constant 0 : index
    %c0_3 = arith.constant 0 : index
    %4 = vector.load %arg3[%c0_2, %c0_3] : memref<128x512xbf16, #tpu.memory_space<vmem>>, vector<128x512xbf16>
    %cst = arith.constant dense<0.000000e+00> : vector<128x512xf32>
    %5 = tpu.matmul %3, %4, %cst {dimension_numbers = #tpu.dot_dimension_numbers<[1], [0], [0], [1], [0, 0, 1, 1], [], []>} : vector<128x128xbf16>, vector<128x512xbf16>, vector<128x512xf32> -> vector<128x512xf32>
    %c0_4 = arith.constant 0 : index
    %c0_5 = arith.constant 0 : index
    %6 = vector.load %arg4[%c0_4, %c0_5] : memref<1x512xf32, #tpu.memory_space<vmem>>, vector<1x512xf32>
    %7 = vector.broadcast %6 : vector<1x512xf32> to vector<128x512xf32>
    %8 = arith.addf %5, %7 : vector<128x512xf32>
    %cst_6 = arith.constant 5.000000e-01 : f32
    %9 = vector.broadcast %cst_6 : f32 to vector<128x512xf32>
    %10 = arith.mulf %9, %8 : vector<128x512xf32>
    %cst_7 = arith.constant 0.707106769 : f32
    %11 = vector.broadcast %cst_7 : f32 to vector<128x512xf32>
    %12 = arith.mulf %8, %11 : vector<128x512xf32>
    %13 = math.erf %12 : vector<128x512xf32>
    %cst_8 = arith.constant 1.000000e+00 : f32
    %14 = vector.broadcast %cst_8 : f32 to vector<128x512xf32>
    %15 = arith.addf %14, %13 : vector<128x512xf32>
    %16 = arith.mulf %10, %15 : vector<128x512xf32>
    %c0_9 = arith.constant 0 : index
    %c0_10 = arith.constant 0 : index
    %17 = vector.load %arg8[%c0_9, %c0_10] : memref<128x128xf32, #tpu.memory_space<vmem>>, vector<128x128xf32>
    %18 = arith.truncf %16 : vector<128x512xf32> to vector<128x512xbf16>
    %c0_11 = arith.constant 0 : index
    %c0_12 = arith.constant 0 : index
    %19 = vector.load %arg5[%c0_11, %c0_12] : memref<512x128xbf16, #tpu.memory_space<vmem>>, vector<512x128xbf16>
    %cst_13 = arith.constant dense<0.000000e+00> : vector<128x128xf32>
    %20 = tpu.matmul %18, %19, %cst_13 {dimension_numbers = #tpu.dot_dimension_numbers<[1], [0], [0], [1], [0, 0, 1, 1], [], []>} : vector<128x512xbf16>, vector<512x128xbf16>, vector<128x128xf32> -> vector<128x128xf32>
    %21 = arith.addf %17, %20 : vector<128x128xf32>
    %c0_14 = arith.constant 0 : index
    %c0_15 = arith.constant 0 : index
    %22 = vector.load %arg8[%c0_14, %c0_15] : memref<128x128xf32, #tpu.memory_space<vmem>>, vector<128x128xf32>
    tpu.vector_store %arg8[%c0_14, %c0_15], %21 {strides = array<i32>} : memref<128x128xf32, #tpu.memory_space<vmem>>, vector<128x128xf32>,
    %c0_i32_16 = arith.constant 0 : i32
    %23 = arith.cmpi eq, %arg1, %c0_i32_16 : i32
    %24 = arith.extui %23 : i1 to i32
    %c0_i32_17 = arith.constant 0 : i32
    %25 = arith.cmpi ne, %24, %c0_i32_17 : i32
    scf.if %25 {
      %c0_18 = arith.constant 0 : index
      %c0_19 = arith.constant 0 : index
      %26 = vector.load %arg8[%c0_18, %c0_19] : memref<128x128xf32, #tpu.memory_space<vmem>>, vector<128x128xf32>
      %c0_20 = arith.constant 0 : index
      %c0_21 = arith.constant 0 : index
      %27 = vector.load %arg6[%c0_20, %c0_21] : memref<1x128xf32, #tpu.memory_space<vmem>>, vector<1x128xf32>
      %28 = vector.broadcast %27 : vector<1x128xf32> to vector<128x128xf32>
      %29 = arith.addf %26, %28 : vector<128x128xf32>
      %c0_22 = arith.constant 0 : index
      %c0_23 = arith.constant 0 : index
      %30 = vector.load %arg7[%c0_22, %c0_23] : memref<128x128xf32, #tpu.memory_space<vmem>>, vector<128x128xf32>
      tpu.vector_store %arg7[%c0_22, %c0_23], %29 {strides = array<i32>} : memref<128x128xf32, #tpu.memory_space<vmem>>, vector<128x128xf32>,
    } else {
    }
    return
  }
  func.func @transform_0(%arg0: i32, %arg1: i32) -> (i32, i32) {
    %c0_i32 = arith.constant 0 : i32
    %c0_i32_0 = arith.constant 0 : i32
    return %arg0, %c0_i32 : i32, i32
  }
  func.func @transform_1(%arg0: i32, %arg1: i32) -> (i32, i32) {
    %c0_i32 = arith.constant 0 : i32
    %c0_i32_0 = arith.constant 0 : i32
    return %c0_i32, %arg1 : i32, i32
  }
  func.func @transform_2(%arg0: i32, %arg1: i32) -> (i32, i32) {
    %c0_i32 = arith.constant 0 : i32
    %c0_i32_0 = arith.constant 0 : i32
    return %c0_i32, %arg1 : i32, i32
  }
  func.func @transform_3(%arg0: i32, %arg1: i32) -> (i32, i32) {
    %c0_i32 = arith.constant 0 : i32
    %c0_i32_0 = arith.constant 0 : i32
    return %arg1, %c0_i32 : i32, i32
  }
  func.func @transform_4(%arg0: i32, %arg1: i32) -> (i32, i32) {
    %c0_i32 = arith.constant 0 : i32
    %c0_i32_0 = arith.constant 0 : i32
    %c0_i32_1 = arith.constant 0 : i32
    return %c0_i32, %c0_i32_0 : i32, i32
  }
  func.func @transform_5(%arg0: i32, %arg1: i32) -> (i32, i32) {
    %c0_i32 = arith.constant 0 : i32
    %c0_i32_0 = arith.constant 0 : i32
    return %arg0, %c0_i32 : i32, i32
  }
}

</mosaic_0001>

<bundles_post_ra>
// kernel: tpu_custom_call.1
= control target key start
LH: loop header
LB: loop body
LE: loop exit
PB: predicated region body
PF: predicated region fallthrough
CT: control target
= control target key end

     0   :  { %s3600_s0 = inlined_call_operand.hbm [shape: f32[256,128], index: 0, kind: input, shape index: {}]   ;;  %s3601_s1 = inlined_call_operand.hbm [shape: bf16[128,512], index: 1, kind: input, shape index: {}]   ;;  %s3602_s2 = inlined_call_operand.hbm [shape: f32[1,512], index: 2, kind: input, shape index: {}]   ;;  %s3603_s3 = inlined_call_operand.hbm [shape: bf16[512,128], index: 3, kind: input, shape index: {}]   ;;  %s3604_s4 = inlined_call_operand.vmem [shape: f32[1,128], index: 4, kind: input, shape index: {}]   ;;  %s3605_s5 = inlined_call_operand.hbm [shape: f32[256,128], index: 5, kind: output, shape index: {}]  }
   0x1   :  { %3610 = sst [smem:[#allocation17_spill]] %s3601_s1 }
   0x2   :  { %10 = vsyncpa [#allocation5], 0 }
   0x3   :  { %12 = vsyncpa [#allocation5 + $0x1], 0 }
   0x4   :  { %13 = vsyncpa [#allocation8], 0 }
   0x5   :  { %14 = vsyncpa [#allocation11], 0 }
   0x6   :  { %15 = vsyncpa [#allocation6], 0 }
   0x7   :  { %17 = vsyncpa [#allocation6 + $0x1], 0  ;;  %s2846_s18 = smov 0   ;;  %s2848_s19 = smov 0  }
   0x8   :  { %s2850_s20 = smov 0   ;;  %s2852_s21 = smov 0  }
   0x9   :  { %s2854_s22 = smov 0   ;;  %s2856_s23 = smov 0  }
   0xa LB: > { %s1985_s24 = sadd.s32 4294967295, %s2800_s23   ;;  %s1986_s25 = sadd.s32 4294967294, %s2800_s23   ;;  %s2800_s23 = sphi %s2856_s23, %s23_s23   ;;  %s2796_s22 = sphi %s2854_s22, %s3629_s22   ;;  %s2792_s21 = sphi %s2852_s21, %s3628_s21   ;;  %s2788_s20 = sphi %s2850_s20, %s3627_s20   ;;  %s2784_s19 = sphi %s2848_s19, %s3626_s19   ;;  %s2780_s18 = sphi %s2846_s18, %s3625_s18  }
   0xb   : > { %p55_p0 = scmp.ne.s32.totalorder %s2784_s19, %s2780_s18  ;;  %p2880_p1 = scmp.eq.s32.totalorder %s1985_s24, 0 }
   0xc   : > { %p2884_p2 = scmp.eq.s32.totalorder %s1985_s24, 1  ;;  %p184_p3 = scmp.eq.s32.totalorder %s1986_s25, 1 }
   0xd   : > { %s3611_s26 = scalar_select %p2880_p1, 1, 0 }
   0xe   : > { %p2890_p4 = por %p2880_p1, %p55_p0  ;;  %p1987_p5 = scmp.ge.s32.totalorder %s2800_s23, 1 }
   0xf   : > { %p2895_p6 = por %p184_p3, %p55_p0  ;;  %p191_p7 = scmp.lt.s32.totalorder %s2800_s23, 3 }
  0x10   : > { %s3613_s28 = scalar_select %p2890_p4, 1, 0 }
  0x11   : > { %s3614_s29 = scalar_select %p2895_p6, 1, 0 }
  0x12   : > { %p2900_p8 = pnand %p1987_p5, %p191_p7  ;;  %s2802_s6 = smov [#allocation7]  }
  0x13   : > { %s206_s7 = sshll.u32 %s2802_s6, 4  ;;  %s2803_s9 = smov [#allocation9]   ;;  %s207_s7 = int_to_ptr.vmem [resolvable:$true] %s206_s7 }
  0x14   : > { %s3615_s30 = scalar_select %p2900_p8, 1, 0 }
  0x15   : > { %p2304_p9 = pneg %p2900_p8  ;;  %s223_s10 = sshll.u32 %s2803_s9, 4  ;;  %s224_s10 = int_to_ptr.vmem [resolvable:$true] %s223_s10 }
  0x16   : > { %s2804_s11 = smov [#allocation10]   ;;  %s2617_s13 = scalar_lea.vmem %s207_s7, 4096 }
  0x17   : > { %p2909_p11 = pnand %p2304_p9, %p2880_p1  ;;  %s236_s12 = sshll.u32 %s2804_s11, 4  ;;  %s237_s12 = int_to_ptr.vmem [resolvable:$true] %s236_s12 }
  0x18   : > { %p2618_p13 = scmp.ne.s32.totalorder %s207_s7, %s2617_s13  ;;  %p2625_p5 = scmp.lt.s32.totalorder %s207_s7, %s207_s7 }
  0x19   : > { %p2608_p12 = pneg %p2909_p11  ;;  %p2626_p7 = scmp.lt.s32.totalorder %s2617_s13, %s2617_s13 }
  0x1b   : > { %p2620_p0 = pnand %p2618_p13, %p2608_p12  ;;  %p2627_p9 = por %p2626_p7, %p2625_p5 }
  0x1d   : > { %p2621_p3 = pneg %p2620_p0 }
  0x1f   : > { %p2628_p10 = pnand %p2627_p9, %p2621_p3 }
  0x21   : > { %2631 = shalt.err (!%p2628_p10)
}
  0x22   : > { %s2805_s14 = smov 256   ;;  %s2806_s15 = smov 16  }
  0x23   : > { %s3617_s1 = sld [smem:[#allocation17_spill]]  ;;  %s2643_s24 = scalar_lea.vmem %s224_s10, 64 }
  0x24   : > { %p2644_p6 = scmp.ne.s32.totalorder %s224_s10, %s2643_s24  ;;  %p2651_p1 = scmp.lt.s32.totalorder %s224_s10, %s224_s10 }
  0x25   : > { %p2652_p4 = scmp.lt.s32.totalorder %s2643_s24, %s2643_s24 }
  0x26   : > { %p2646_p13 = pnand %p2644_p6, %p2608_p12 }
  0x27   : > { %p2653_p5 = por %p2652_p4, %p2651_p1 }
  0x28   : > { %p2647_p0 = pneg %p2646_p13 }
  0x29   : > { %2307 = dma.hbm_to_vmem [thread:$0]  (!%p2909_p11), %s3617_s1, 4096, %s207_s7, [#allocation8], %s2805_s14, %s2805_s14, %s2806_s15  }
  0x2a   : > { %p2654_p3 = pnand %p2653_p5, %p2647_p0 }
  0x2c   : > { %2657 = shalt.err (!%p2654_p3)
}
  0x2d   : > { %2310 = dma.hbm_to_vmem [thread:$0]  (!%p2909_p11), %s3602_s2, 64, %s224_s10, [#allocation8]  }
  0x2e   : > { %s2669_s7 = scalar_lea.vmem %s237_s12, 4096  ;;  %p2677_p9 = scmp.lt.s32.totalorder %s237_s12, %s237_s12 }
  0x2f   : > { %p2670_p10 = scmp.ne.s32.totalorder %s237_s12, %s2669_s7  ;;  %p2678_p13 = scmp.lt.s32.totalorder %s2669_s7, %s2669_s7 }
  0x31   : > { %p2672_p7 = pnand %p2670_p10, %p2608_p12  ;;  %p2679_p8 = por %p2678_p13, %p2677_p9 }
  0x33   : > { %p2673_p6 = pneg %p2672_p7 }
  0x35   : > { %p2680_p1 = pnand %p2679_p8, %p2673_p6 }
  0x37   : > { %2683 = shalt.err (!%p2680_p1)
}
  0x38   : > { %s2807_s9 = smov 64   ;;  %s2808_s10 = smov 4  }
  0x39   : > { %2313 = dma.hbm_to_vmem [thread:$0]  (!%p2909_p11), %s3603_s3, 4096, %s237_s12, [#allocation11], %s2807_s9, %s2807_s9, %s2808_s10  }
  0x3a   : > { %s42_s14 = sadd.s32 1, %s2788_s20  ;;  %s35_s15 = sadd.s32 1, %s2796_s22 }
  0x3b   : > { %p49_p4 = scmp.ne.s32.totalorder %s2788_s20, %s2784_s19  ;;  %p37_p8 = scmp.ge.s32.totalorder %s35_s15, 2 }
  0x3c   : > { %p50_p12 = scmp.eq.s32.totalorder %s2800_s23, 0  ;;  %p2325_p5 = scmp.lt.s32.totalorder %s2800_s23, 2 }
  0x3d   : > { %p2946_p0 = por %p2884_p2, %p49_p4  ;;  %s3631_s15 = smov (%p37_p8, %s35_s15), 0 }
  0x3e   : > { %p51_p3 = por %p50_p12, %p49_p4  ;;  %s253_s8 = sand.u32 1, %s2788_s20  }
  0x3f   : > { %s39_s17 = ssub.s32 %s2796_s22, %s3631_s15  ;;  %s1992_s12 = sshll.u32 %s253_s8, 7 }
  0x40   : > { %p40_p10 = scmp.eq.s32.totalorder %s39_s17, 0  ;;  %s2095_s24 = sshll.u32 %s2796_s22, 11 }
  0x41   : > { %s263_s27 = scalar_lea.hbm %s3600_s0, %s2095_s24  ;;  %s257_s9 = scalar_lea.vmem [#allocation4], %s1992_s12 }
  0x42   : > { %s2958_s25 = scalar_select %p40_p10, %s2788_s20, %s42_s14  }
  0x43   : > { %s264_s10 = sshll.u32 %s257_s9, 4  ;;  %p2965_p2 = pnand %p2325_p5, %p51_p3  ;;  %s265_s10 = int_to_ptr.vmem [resolvable:$true] %s264_s10 }
  0x44   : > { %s254_s13 = scalar_lea.sflag [#allocation5], %s253_s8  ;;  %s2697_s17 = scalar_lea.vmem %s265_s10, 2048 }
  0x45   : > { %p2686_p11 = pneg %p2965_p2  ;;  %p2698_p7 = scmp.ne.s32.totalorder %s265_s10, %s2697_s17 }
  0x46   : > { %s2809_s14 = smov [#allocation4]  }
  0x47   : > { %p2700_p6 = pnand %p2698_p7, %p2686_p11  ;;  %s2702_s1 = sshll.u32 %s2809_s14, 4  ;;  %s2703_s1 = int_to_ptr.vmem [resolvable:$false] %s2702_s1 }
  0x48   : > { %s2704_s24 = scalar_lea.vmem %s2703_s1, 4096  ;;  %p2705_p13 = scmp.lt.s32.totalorder %s265_s10, %s2703_s1 }
  0x49   : > { %p2701_p9 = pneg %p2700_p6  ;;  %p2706_p1 = scmp.lt.s32.totalorder %s2704_s24, %s2697_s17 }
  0x4b   : > { %p2707_p4 = por %p2706_p1, %p2705_p13 }
  0x4d   : > { %p2708_p8 = pnand %p2707_p4, %p2701_p9 }
  0x4f   : > { %2711 = shalt.err (!%p2708_p8)
}
  0x50   : > { %s2810_s12 = smov 128   ;;  %s2811_s6 = smov 8  }
  0x51   : > { %2317 = dma.hbm_to_vmem [thread:$0]  (!%p2965_p2), %s263_s27, 2048, %s265_s10, %s254_s13, %s2810_s12, %s2810_s12, %s2811_s6  }
  0x52   : > { %p3620_p12 = scmp.ne.s32.totalorder %s3615_s30, 0 }
  0x53   : > { %s2976_s8 = sand.u32 (!%p3620_p12), 1, %s2784_s19   ;;  %p3621_p5 = scmp.ne.s32.totalorder (!%p3620_p12), %s3613_s28, 0 }
  0x54   : > { %276 = sbr.rel (%p3620_p12) target bundleno = 659 (0x293), region = 40  ;;  %s1996_s1 = sshll.u32 (!%p3620_p12), %s2976_s8, 7 }
  0x55   : > { %s279_s7 = scalar_lea.sflag (!%p3620_p12), [#allocation5], %s2976_s8  ;;  %s2982_s9 = scalar_lea.vmem (!%p3620_p12), [#allocation4], %s1996_s1 }
  0x59   : > { %2763 = dma.done.wait (%p3621_p5), %s279_s7, 2048  }
  0x5a   : > { %2765 = vsyncadd (%p3621_p5), %s279_s7, 4294965248  ;;  %p3622_p3 = scmp.ne.s32.totalorder %s3611_s26, 0 }
  0x5c   : > { %2767 = dma.done.wait (%p3622_p3), [#allocation8], 4160  }
  0x5d   : > { %2769 = vsyncadd (%p3622_p3), [#allocation8], 4294963136 }
  0x5e   : > { %2771 = dma.done.wait (%p3622_p3), [#allocation11], 4096  }
  0x5f   : > { %2773 = vsyncadd (%p3622_p3), [#allocation11], 4294963200  ;;  %v2812_v0 = vmov 0   ;;  %v2390_v1 = vld [vmem:[#allocation7 + $0xe4] ss:$16 sps:$4 sm:$0xff]   ;;  %v348_v28 = vld [vmem:[%s2982_s9 + $0x8] sm:$0xff] }
  0x60   : > { %753 = vmatprep.mubr.bf16.mxu0 %v2812_v0  ;;  %866 = vmatprep.mubr.bf16.mxu1 %v2812_v0  ;;  %v2392_v2 = vld [vmem:[#allocation7 + $0xec] ss:$16 sps:$4 sm:$0xff]   ;;  %v2394_v3 = vld [vmem:[#allocation7 + $0xe0] ss:$16 sps:$4 sm:$0xff]   ;;  %v2395_v4 = vld [vmem:[#allocation7 + $0xe8] ss:$16 sps:$4 sm:$0xff]  }
  0x61   : > { %721 = vmatprep.subr.bf16.mxu0 %v2390_v1  ;;  %834 = vmatprep.subr.bf16.mxu1 %v2392_v2  ;;  %v2396_v5 = vld [vmem:[#allocation7 + $0xc4] ss:$16 sps:$4 sm:$0xff]   ;;  %v2398_v6 = vld [vmem:[#allocation7 + $0xcc] ss:$16 sps:$4 sm:$0xff]   ;;  %v2400_v7 = vld [vmem:[#allocation7 + $0xc0] ss:$16 sps:$4 sm:$0xff]  }
  0x62   : > { %722 = vmatpush1.bf16.msra.mxu0 %v2394_v3  ;;  %835 = vmatpush1.bf16.msra.mxu1 %v2395_v4  ;;  %v2401_v8 = vld [vmem:[#allocation7 + $0xc8] ss:$16 sps:$4 sm:$0xff]   ;;  %v2402_v9 = vld [vmem:[#allocation7 + $0xa4] ss:$16 sps:$4 sm:$0xff]   ;;  %v2404_v10 = vld [vmem:[#allocation7 + $0xac] ss:$16 sps:$4 sm:$0xff]  }
  0x63   : > { %723 = vmatprep.subr.bf16.mxu0 %v2396_v5  ;;  %836 = vmatprep.subr.bf16.mxu1 %v2398_v6  ;;  %v2406_v11 = vld [vmem:[#allocation7 + $0xa0] ss:$16 sps:$4 sm:$0xff]   ;;  %v2407_v12 = vld [vmem:[#allocation7 + $0xa8] ss:$16 sps:$4 sm:$0xff]   ;;  %v2408_v13 = vld [vmem:[#allocation7 + $0x84] ss:$16 sps:$4 sm:$0xff]  }
  0x64   : > { %v2410_v14 = vld [vmem:[#allocation7 + $0x8c] ss:$16 sps:$4 sm:$0xff]   ;;  %v2412_v15 = vld [vmem:[#allocation7 + $0x80] ss:$16 sps:$4 sm:$0xff]   ;;  %v2413_v16 = vld [vmem:[#allocation7 + $0x88] ss:$16 sps:$4 sm:$0xff]  }
  0x65   : > { %v2414_v17 = vld [vmem:[#allocation7 + $0x64] ss:$16 sps:$4 sm:$0xff]   ;;  %v2416_v18 = vld [vmem:[#allocation7 + $0x6c] ss:$16 sps:$4 sm:$0xff]   ;;  %v2418_v19 = vld [vmem:[#allocation7 + $0x60] ss:$16 sps:$4 sm:$0xff]  }
  0x66   : > { %724 = vmatpush1.bf16.msra.mxu0 %v2400_v7  ;;  %837 = vmatpush1.bf16.msra.mxu1 %v2401_v8  ;;  %v2419_v20 = vld [vmem:[#allocation7 + $0x68] ss:$16 sps:$4 sm:$0xff]   ;;  %v2420_v21 = vld [vmem:[#allocation7 + $0x44] ss:$16 sps:$4 sm:$0xff]   ;;  %v2422_v22 = vld [vmem:[#allocation7 + $0x4c] ss:$16 sps:$4 sm:$0xff]  }
  0x67   : > { %725 = vmatprep.subr.bf16.mxu0 %v2402_v9  ;;  %838 = vmatprep.subr.bf16.mxu1 %v2404_v10  ;;  %v2424_v23 = vld [vmem:[#allocation7 + $0x40] ss:$16 sps:$4 sm:$0xff]   ;;  %v2425_v24 = vld [vmem:[#allocation7 + $0x48] ss:$16 sps:$4 sm:$0xff]   ;;  %v2426_v25 = vld [vmem:[#allocation7 + $0x24] ss:$16 sps:$4 sm:$0xff]  }
  0x68   : > { %v2428_v26 = vld [vmem:[#allocation7 + $0x2c] ss:$16 sps:$4 sm:$0xff]   ;;  %v347_v27 = vld [vmem:[%s2982_s9] sm:$0xff]  ;;  %v2431_v30 = vld [vmem:[#allocation7 + $0x28] ss:$16 sps:$4 sm:$0xff]   ;;  %s3512_s30 = scalar_lea.vmem [#allocation12], %s1996_s1 }
  0x69   : > { %v2430_v29 = vld [vmem:[#allocation7 + $0x20] ss:$16 sps:$4 sm:$0xff]   ;;  %v2116_v31 = vpack.c.bf16 %v348_v28, %v347_v27  ;;  %v350_v33 = vld [vmem:[%s2982_s9 + $0x18] sm:$0xff]  ;;  %v2432_v35 = vld [vmem:[#allocation7 + $0x4] ss:$16 sps:$4 sm:$0xff]   ;;  %s2112_s27 = sshll.u32 %s2792_s21, 11 }
  0x6a   : > { %726 = vmatpush1.bf16.msra.mxu0 %v2406_v11  ;;  %839 = vmatpush1.bf16.msra.mxu1 %v2407_v12  ;;  %v349_v32 = vld [vmem:[%s2982_s9 + $0x10] sm:$0xff]  ;;  %v351_v34 = vld [vmem:[%s2982_s9 + $0x20] sm:$0xff]  ;;  %v2434_v36 = vld [vmem:[#allocation7 + $0xc] ss:$16 sps:$4 sm:$0xff]   ;;  %s1869_s10 = sshll.u32 %s3512_s30, 4  ;;  %s3548_s17 = scalar_lea.hbm %s3605_s5, %s2112_s27  ;;  %s3550_s10 = int_to_ptr.vmem [resolvable:$true] %s1869_s10 }
  0x6b   : > { %727 = vmatprep.subr.bf16.mxu0 %v2408_v13  ;;  %840 = vmatprep.subr.bf16.mxu1 %v2410_v14  ;;  %v2121_v37 = vpack.c.bf16 %v350_v33, %v349_v32  ;;  %v352_v38 = vld [vmem:[%s2982_s9 + $0x28] sm:$0xff]  ;;  %v353_v39 = vld [vmem:[%s2982_s9 + $0x30] sm:$0xff]  ;;  %v354_v40 = vld [vmem:[%s2982_s9 + $0x38] sm:$0xff]  ;;  %2117 = vst [vmem:[#allocation3] sm:$0xff] %v2116_v31   ;;  %v493_v33 = vlaneseq  ;;  %s1856_s14 = scalar_lea.sflag [#allocation6], %s2976_s8  ;;  %s2712_s24 = scalar_lea.vmem %s3550_s10, 2048 }
  0x6c   : > { %v2126_v41 = vpack.c.bf16 %v352_v38, %v351_v34  ;;  %v2131_v42 = vpack.c.bf16 %v354_v40, %v353_v39  ;;  %v355_v43 = vld [vmem:[%s2982_s9 + $0x40] sm:$0xff]  ;;  %v356_v44 = vld [vmem:[%s2982_s9 + $0x48] sm:$0xff]  ;;  %v357_v45 = vld [vmem:[%s2982_s9 + $0x50] sm:$0xff]  ;;  %p2713_p10 = scmp.ne.s32.totalorder %s3550_s10, %s2712_s24  ;;  %s2813_s21 = smov [#allocation12]  }
  0x6d   : > { %2153 = vst [vmem:[#allocation3 + $0x8] sm:$0xff] %v2121_v37   ;;  %v2136_v46 = vpack.c.bf16 %v356_v44, %v355_v43  ;;  %v358_v47 = vld [vmem:[%s2982_s9 + $0x58] sm:$0xff]  ;;  %v359_v48 = vld [vmem:[%s2982_s9 + $0x60] sm:$0xff]  ;;  %v360_v49 = vld [vmem:[%s2982_s9 + $0x68] sm:$0xff]  ;;  %v494_v34 = vshrl.u32 %v493_v33, 7  ;;  %s2716_s12 = sshll.u32 %s2813_s21, 4  ;;  %s2717_s12 = int_to_ptr.vmem [resolvable:$false] %s2716_s12 }
  0x6e   : > { %728 = vmatpush1.bf16.msra.mxu0 %v2412_v15  ;;  %841 = vmatpush1.bf16.msra.mxu1 %v2413_v16  ;;  %v2436_v50 = vld [vmem:[#allocation7] ss:$16 sps:$4 sm:$0xff]   ;;  %2154 = vst [vmem:[#allocation3 + $0x10] sm:$0xff] %v2126_v41   ;;  %2155 = vst [vmem:[#allocation3 + $0x18] sm:$0xff] %v2131_v42   ;;  %v2141_v51 = vpack.c.bf16 %v358_v47, %v357_v45  ;;  %v2146_v52 = vpack.c.bf16 %v360_v49, %v359_v48  ;;  %v362_v54 = vld [vmem:[%s2982_s9 + $0x78] sm:$0xff]  ;;  %p2714_p2 = pnand %p2713_p10, %p2946_p0  ;;  %s2718_s6 = scalar_lea.vmem %s2717_s12, 4096 }
  0x6f   : > { %729 = vmatprep.subr.bf16.mxu0 %v2414_v17  ;;  %842 = vmatprep.subr.bf16.mxu1 %v2416_v18  ;;  %v361_v53 = vld [vmem:[%s2982_s9 + $0x70] sm:$0xff]  ;;  %v2437_v55 = vld [vmem:[#allocation7 + $0x8] ss:$16 sps:$4 sm:$0xff]   ;;  %2156 = vst [vmem:[#allocation3 + $0x20] sm:$0xff] %v2136_v46   ;;  %v2446_v57 = vld [vmem:[#allocation10 + $0x78] sm:$0xff]   ;;  %v503_v37 = vsub.s32 2, %v494_v34  ;;  %p2719_p7 = scmp.lt.s32.totalorder %s3550_s10, %s2717_s12  ;;  %p2720_p6 = scmp.lt.s32.totalorder %s2718_s6, %s2712_s24 }
  0x70   : > { %v2151_v56 = vpack.c.bf16 %v362_v54, %v361_v53  ;;  %2157 = vst [vmem:[#allocation3 + $0x28] sm:$0xff] %v2141_v51   ;;  %2158 = vst [vmem:[#allocation3 + $0x30] sm:$0xff] %v2146_v52   ;;  %v2447_v58 = vld [vmem:[#allocation10 + $0xf8] sm:$0xff]   ;;  %v2450_v63 = vld [vmem:[#allocation10 + $0x70] sm:$0xff]   ;;  %v499_v38 = vsub.s32 1, %v494_v34  ;;  %v507_v40 = vsub.s32 3, %v494_v34  ;;  %p2715_p11 = pneg %p2714_p2 }
  0x71   : > { %v2448_v60 = vld [vmem:[#allocation10 + $0x38] sm:$0xff]   ;;  %v2451_v1 = vld [vmem:[#allocation10 + $0xf0] sm:$0xff]   ;;  %v2454_v4 = vld [vmem:[#allocation10 + $0x68] sm:$0xff]   ;;  %p2721_p9 = por %p2720_p6, %p2719_p7 }
  0x72   : > { %730 = vmatpush1.bf16.msra.mxu0 %v2418_v19  ;;  %843 = vmatpush1.bf16.msra.mxu1 %v2419_v20  ;;  %2159 = vst [vmem:[#allocation3 + $0x38] sm:$0xff] %v2151_v56   ;;  %v2438_v59 = vld [vmem:[#allocation3] sm:$0xff]   ;;  %v2452_v2 = vld [vmem:[#allocation10 + $0x30] sm:$0xff]   ;;  %v2455_v5 = vld [vmem:[#allocation10 + $0xe8] sm:$0xff]  }
  0x73   : > { %731 = vmatprep.subr.bf16.mxu0 %v2420_v21  ;;  %844 = vmatprep.subr.bf16.mxu1 %v2422_v22  ;;  %v2449_v61 = vld [vmem:[#allocation10 + $0xb8] sm:$0xff]   ;;  %v2453_v3 = vld [vmem:[#allocation10 + $0xb0] sm:$0xff]   ;;  %v2456_v7 = vld [vmem:[#allocation10 + $0x28] sm:$0xff]   ;;  %p2722_p13 = pnand %p2721_p9, %p2715_p11 }
  0x74   : > { %v2439_v62 = vld [vmem:[#allocation3 + $0x8] sm:$0xff]   ;;  %v2462_v13 = vld [vmem:[#allocation10 + $0x58] sm:$0xff]   ;;  %v2466_v22 = vld [vmem:[#allocation10 + $0x50] sm:$0xff]  }
  0x75   : > { %v2440_v6 = vld [vmem:[#allocation3 + $0x10] sm:$0xff]   ;;  %v2458_v9 = vld [vmem:[#allocation10 + $0x60] sm:$0xff]   ;;  %v2463_v14 = vld [vmem:[#allocation10 + $0xd8] sm:$0xff]  }
  0x76   : > { %732 = vmatpush1.bf16.msra.mxu0 %v2424_v23  ;;  %845 = vmatpush1.bf16.msra.mxu1 %v2425_v24  ;;  %v2457_v8 = vld [vmem:[#allocation10 + $0xa8] sm:$0xff]   ;;  %v2459_v10 = vld [vmem:[#allocation10 + $0xe0] sm:$0xff]   ;;  %v2441_v15 = vld [vmem:[#allocation3 + $0x18] sm:$0xff]  }
  0x77   : > { %733 = vmatprep.subr.bf16.mxu0 %v2426_v25  ;;  %846 = vmatprep.subr.bf16.mxu1 %v2428_v26  ;;  %v2460_v11 = vld [vmem:[#allocation10 + $0x20] sm:$0xff]   ;;  %v2444_v18 = vld [vmem:[#allocation3 + $0x30] sm:$0xff]   ;;  %v2464_v20 = vld [vmem:[#allocation10 + $0x18] sm:$0xff]  }
  0x78   : > { %v2461_v12 = vld [vmem:[#allocation10 + $0xa0] sm:$0xff]   ;;  %v2465_v21 = vld [vmem:[#allocation10 + $0x98] sm:$0xff]   ;;  %v2467_v23 = vld [vmem:[#allocation10 + $0xd0] sm:$0xff]  }
  0x79   : > { %v2442_v16 = vld [vmem:[#allocation3 + $0x20] sm:$0xff]   ;;  %v2443_v17 = vld [vmem:[#allocation3 + $0x28] sm:$0xff]   ;;  %v2445_v19 = vld [vmem:[#allocation3 + $0x38] sm:$0xff]  }
  0x7a   : > { %734 = vmatpush1.bf16.msra.mxu0 %v2430_v29  ;;  %847 = vmatpush1.bf16.msra.mxu1 %v2431_v30  ;;  %v2468_v24 = vld [vmem:[#allocation10 + $0x10] sm:$0xff]   ;;  %v2470_v26 = vld [vmem:[#allocation10 + $0x48] sm:$0xff]   ;;  %v2475_v30 = vld [vmem:[#allocation10 + $0xc0] sm:$0xff]  }
  0x7b   : > { %735 = vmatprep.subr.bf16.mxu0 %v2432_v35  ;;  %848 = vmatprep.subr.bf16.mxu1 %v2434_v36  ;;  %v2469_v25 = vld [vmem:[#allocation10 + $0x90] sm:$0xff]   ;;  %v2471_v27 = vld [vmem:[#allocation10 + $0xc8] sm:$0xff]   ;;  %v2476_v31 = vld [vmem:[#allocation10] sm:$0xff]   ;;  %v495_v35 = vsub.s32 0, %v494_v34 }
  0x7c   : > { %v2472_v28 = vld [vmem:[#allocation10 + $0x8] sm:$0xff]   ;;  %v2477_v32 = vld [vmem:[#allocation10 + $0x80] sm:$0xff]   ;;  %v491_v36 = vld [vmem:[#allocation9] sm:$0xf] }
  0x7d   : > { %v2473_v29 = vld [vmem:[#allocation10 + $0x88] sm:$0xff]   ;;  %v3028_v39 = vrot.slane %v491_v36, %v495_v35  ;;  %v3030_v42 = vrot.slane %v491_v36, %v503_v37  ;;  %v3032_v44 = vrot.slane %v491_v36, %v499_v38  ;;  %v3035_v48 = vrot.slane %v491_v36, %v507_v40 }
  0x7e   : > { %736 = vmatpush1.bf16.msra.mxu0 %v2436_v50  ;;  %849 = vmatpush1.bf16.msra.mxu1 %v2437_v55 }
  0x7f   : > { %2160 = vmatprep.subr.bf16.mxu0 %v2446_v57  ;;  %2224 = vmatprep.subr.bf16.mxu1 %v2447_v58 }
  0x81   : > { %754 = vmatmul.mubr.bf16.vlgmr.msra.gmra.mxu0 %v2438_v59  ;;  %867 = vmatmul.mubr.bf16.vlgmr.msra.gmra.mxu1 %v2438_v59 }
  0x82   : > { %763 = vmatprep.mubr.bf16.mxu0 %v2812_v0  ;;  %876 = vmatprep.mubr.bf16.mxu1 %v2812_v0 }
  0x83   : > { %2161 = vmatpush3.bf16.msra.mxu0 %v2448_v60  ;;  %2225 = vmatpush3.bf16.msra.mxu1 %v2449_v61 }
  0x84   : > { %2162 = vmatprep.subr.bf16.mxu0 %v2450_v63  ;;  %2226 = vmatprep.subr.bf16.mxu1 %v2451_v1 }
  0x87   : > { %2163 = vmatpush3.bf16.msra.mxu0 %v2452_v2  ;;  %2227 = vmatpush3.bf16.msra.mxu1 %v2453_v3 }
  0x88   : > { %2164 = vmatprep.subr.bf16.mxu0 %v2454_v4  ;;  %2228 = vmatprep.subr.bf16.mxu1 %v2455_v5 }
  0x89   : > { %764 = vmatmul.mubr.bf16.gmra.mxu0 %v2439_v62  ;;  %877 = vmatmul.mubr.bf16.gmra.mxu1 %v2439_v62 }
  0x8a   : > { %773 = vmatprep.mubr.bf16.mxu0 %v2812_v0  ;;  %886 = vmatprep.mubr.bf16.mxu1 %v2812_v0 }
  0x8b   : > { %2165 = vmatpush3.bf16.msra.mxu0 %v2456_v7  ;;  %2229 = vmatpush3.bf16.msra.mxu1 %v2457_v8 }
  0x8c   : > { %2166 = vmatprep.subr.bf16.mxu0 %v2458_v9  ;;  %2230 = vmatprep.subr.bf16.mxu1 %v2459_v10 }
  0x8f   : > { %2167 = vmatpush3.bf16.msra.mxu0 %v2460_v11  ;;  %2231 = vmatpush3.bf16.msra.mxu1 %v2461_v12 }
  0x90   : > { %2168 = vmatprep.subr.bf16.mxu0 %v2462_v13  ;;  %2232 = vmatprep.subr.bf16.mxu1 %v2463_v14 }
  0x91   : > { %774 = vmatmul.mubr.bf16.gmra.mxu0 %v2440_v6  ;;  %887 = vmatmul.mubr.bf16.gmra.mxu1 %v2440_v6 }
  0x92   : > { %783 = vmatprep.mubr.bf16.mxu0 %v2812_v0  ;;  %896 = vmatprep.mubr.bf16.mxu1 %v2812_v0 }
  0x93   : > { %2169 = vmatpush3.bf16.msra.mxu0 %v2464_v20  ;;  %2233 = vmatpush3.bf16.msra.mxu1 %v2465_v21 }
  0x94   : > { %2170 = vmatprep.subr.bf16.mxu0 %v2466_v22  ;;  %2234 = vmatprep.subr.bf16.mxu1 %v2467_v23 }
  0x97   : > { %2171 = vmatpush3.bf16.msra.mxu0 %v2468_v24  ;;  %2235 = vmatpush3.bf16.msra.mxu1 %v2469_v25 }
  0x98   : > { %2172 = vmatprep.subr.bf16.mxu0 %v2470_v26  ;;  %2236 = vmatprep.subr.bf16.mxu1 %v2471_v27 }
  0x99   : > { %784 = vmatmul.mubr.bf16.gmra.mxu0 %v2441_v15  ;;  %897 = vmatmul.mubr.bf16.gmra.mxu1 %v2441_v15 }
  0x9a   : > { %793 = vmatprep.mubr.bf16.mxu0 %v2812_v0  ;;  %906 = vmatprep.mubr.bf16.mxu1 %v2812_v0 }
  0x9b   : > { %2173 = vmatpush3.bf16.msra.mxu0 %v2472_v28  ;;  %2237 = vmatpush3.bf16.msra.mxu1 %v2473_v29 }
  0x9c   : > { %2238 = vmatprep.subr.bf16.mxu1 %v2475_v30 }
  0x9f   : > { %2239 = vmatpush3.bf16.msra.mxu1 %v2477_v32 }
  0xa1   : > { %794 = vmatmul.mubr.bf16.gmra.mxu0 %v2442_v16  ;;  %907 = vmatmul.mubr.bf16.gmra.mxu1 %v2442_v16 }
  0xa2   : > { %803 = vmatprep.mubr.bf16.mxu0 %v2812_v0  ;;  %916 = vmatprep.mubr.bf16.mxu1 %v2812_v0 }
  0xa9   : > { %804 = vmatmul.mubr.bf16.gmra.mxu0 %v2443_v17  ;;  %917 = vmatmul.mubr.bf16.gmra.mxu1 %v2443_v17 }
  0xaa   : > { %813 = vmatprep.mubr.bf16.mxu0 %v2812_v0  ;;  %926 = vmatprep.mubr.bf16.mxu1 %v2812_v0 }
  0xb1   : > { %814 = vmatmul.mubr.bf16.gmra.mxu0 %v2444_v18  ;;  %927 = vmatmul.mubr.bf16.gmra.mxu1 %v2444_v18 }
  0xb2   : > { %823 = vmatprep.mubr.bf16.mxu0 %v2812_v0  ;;  %936 = vmatprep.mubr.bf16.mxu1 %v2812_v0  ;;  %v2474_v0 = vld [vmem:[#allocation10 + $0x40] sm:$0xff]  }
  0xb3   : > { %2174 = vmatprep.subr.bf16.mxu0 %v2474_v0 }
  0xb4   : > { %2175 = vmatpush3.bf16.msra.mxu0 %v2476_v31 }
  0xb9   : > { %824 = vmatmul.mubr.bf16.gmra.mxu0 %v2445_v19  ;;  %937 = vmatmul.mubr.bf16.gmra.mxu1 %v2445_v19 }
 0x141   : > { %v755_v41 = vpop.f32.mrf.mxu0  ;;  %v868_v43 = vpop.f32.mrf.mxu1 }
 0x142   : > { %v756_v47 = vadd.f32 %v755_v41, %v3028_v39  ;;  %v869_v49 = vadd.f32 %v868_v43, %v3030_v42 }
 0x143   : > { %v757_v45 = vpop.f32.mrf.mxu0  ;;  %v870_v46 = vpop.f32.mrf.mxu1 }
 0x144   : > { %v758_v52 = vadd.f32 %v757_v45, %v3032_v44  ;;  %v1011_v56 = vmul.f32 0.70710677, %v756_v47  ;;  %v871_v57 = vadd.f32 %v870_v46, %v3035_v48  ;;  %v1013_v58 = vmul.f32 0.70710677, %v869_v49 }
 0x145   : > { %v759_v50 = vpop.f32.mrf.mxu0  ;;  %v872_v51 = vpop.f32.mrf.mxu1  ;;  %v947_v0 = vmul.f32 0.5, %v756_v47  ;;  %v3053_v30 = vmul.f32 0.5, %v869_v49 }
 0x146   : > { %v760_v53 = vadd.f32 %v759_v50, %v3028_v39  ;;  %v873_v59 = vadd.f32 %v872_v51, %v3030_v42  ;;  %v1012_v62 = vmul.f32 0.70710677, %v758_v52  ;;  %2478 = verf.f32 %v1011_v56 }
 0x147   : > { %v761_v54 = vpop.f32.mrf.mxu0  ;;  %v874_v55 = vpop.f32.mrf.mxu1  ;;  %v1014_v4 = vmul.f32 0.70710677, %v871_v57  ;;  %2480 = verf.f32 %v1013_v58  ;;  %v3060_v35 = vmul.f32 0.5, %v758_v52  ;;  %v3063_v40 = vmul.f32 0.5, %v871_v57 }
 0x148   : > { %v1015_v63 = vmul.f32 0.70710677, %v760_v53  ;;  %v762_v1 = vadd.f32 %v761_v54, %v3032_v44  ;;  %v875_v5 = vadd.f32 %v874_v55, %v3035_v48  ;;  %v1017_v6 = vmul.f32 0.70710677, %v873_v59 }
 0x149   : > { %v765_v60 = vpop.f32.mrf.mxu0  ;;  %v878_v61 = vpop.f32.mrf.mxu1  ;;  %2482 = verf.f32 %v1012_v62  ;;  %v951_v41 = vmul.f32 0.5, %v760_v53  ;;  %v3065_v43 = vmul.f32 0.5, %v873_v59 }
 0x14a   : > { %v766_v7 = vadd.f32 %v765_v60, %v3028_v39  ;;  %v879_v10 = vadd.f32 %v878_v61, %v3030_v42  ;;  %2484 = verf.f32 %v1015_v63  ;;  %v1016_v11 = vmul.f32 0.70710677, %v762_v1 }
 0x14b   : > { %v767_v2 = vpop.f32.mrf.mxu0  ;;  %v880_v3 = vpop.f32.mrf.mxu1  ;;  %2486 = verf.f32 %v1014_v4  ;;  %v1018_v15 = vmul.f32 0.70710677, %v875_v5  ;;  %v3071_v50 = vmul.f32 0.5, %v762_v1  ;;  %v3073_v51 = vmul.f32 0.5, %v875_v5 }
 0x14c   : > { %v768_v12 = vadd.f32 %v767_v2, %v3032_v44  ;;  %v881_v16 = vadd.f32 %v880_v3, %v3035_v48  ;;  %2488 = verf.f32 %v1017_v6  ;;  %v1019_v17 = vmul.f32 0.70710677, %v766_v7 }
 0x14d   : > { %v769_v8 = vpop.f32.mrf.mxu0  ;;  %v882_v9 = vpop.f32.mrf.mxu1  ;;  %v1021_v20 = vmul.f32 0.70710677, %v879_v10  ;;  %2490 = verf.f32 %v1016_v11  ;;  %v3075_v52 = vmul.f32 0.5, %v766_v7  ;;  %v3078_v56 = vmul.f32 0.5, %v879_v10 }
 0x14e   : > { %v1020_v21 = vmul.f32 0.70710677, %v768_v12  ;;  %v770_v22 = vadd.f32 %v769_v8, %v3028_v39  ;;  %2492 = verf.f32 %v1018_v15  ;;  %v1022_v25 = vmul.f32 0.70710677, %v881_v16 }
 0x14f   : > { %v771_v13 = vpop.f32.mrf.mxu0  ;;  %v884_v14 = vpop.f32.mrf.mxu1  ;;  %v883_v26 = vadd.f32 %v882_v9, %v3030_v42  ;;  %2494 = verf.f32 %v1019_v17  ;;  %v3085_v61 = vmul.f32 0.5, %v768_v12  ;;  %v3087_v62 = vmul.f32 0.5, %v881_v16 }
 0x150   : > { %v772_v27 = vadd.f32 %v771_v13, %v3032_v44  ;;  %2496 = verf.f32 %v1021_v20  ;;  %v1023_v31 = vmul.f32 0.70710677, %v770_v22  ;;  %v885_v32 = vadd.f32 %v884_v14, %v3035_v48 }
 0x151   : > { %v775_v18 = vpop.f32.mrf.mxu0  ;;  %v888_v19 = vpop.f32.mrf.mxu1  ;;  %2498 = verf.f32 %v1020_v21  ;;  %v1025_v36 = vmul.f32 0.70710677, %v883_v26  ;;  %v3089_v3 = vmul.f32 0.5, %v770_v22  ;;  %v3096_v9 = vmul.f32 0.5, %v883_v26 }
 0x152   : > { %2500 = verf.f32 %v1022_v25  ;;  %v776_v37 = vadd.f32 %v775_v18, %v3028_v39  ;;  %v1024_v45 = vmul.f32 0.70710677, %v772_v27  ;;  %v889_v54 = vadd.f32 %v888_v19, %v3030_v42 }
 0x153   : > { %v777_v23 = vpop.f32.mrf.mxu0  ;;  %v890_v24 = vpop.f32.mrf.mxu1  ;;  %2502 = verf.f32 %v1023_v31  ;;  %v1026_v53 = vmul.f32 0.70710677, %v885_v32  ;;  %v3098_v10 = vmul.f32 0.5, %v772_v27  ;;  %v3104_v19 = vmul.f32 0.5, %v885_v32 }
 0x154   : > { %v2479_v38 = vpop.eup %2478  ;;  %v778_v57 = vadd.f32 %v777_v23, %v3032_v44  ;;  %2504 = verf.f32 %v1025_v36  ;;  %v1027_v63 = vmul.f32 0.70710677, %v776_v37  ;;  %v891_v4 = vadd.f32 %v890_v24, %v3035_v48 }
 0x155   : > { %v779_v28 = vpop.f32.mrf.mxu0  ;;  %v3051_v29 = vpop.f32.mrf.mxu1  ;;  %v1139_v2 = vadd.f32 1.0, %v2479_v38  ;;  %2506 = verf.f32 %v1024_v45  ;;  %v1029_v11 = vmul.f32 0.70710677, %v889_v54  ;;  %v3109_v24 = vmul.f32 0.5, %v776_v37 }
 0x156   : > { %v2481_v49 = vpop.eup %2480  ;;  %2508 = verf.f32 %v1026_v53  ;;  %v1028_v14 = vmul.f32 0.70710677, %v778_v57  ;;  %v780_v20 = vadd.f32 %v779_v28, %v3028_v39  ;;  %v1030_v25 = vmul.f32 0.70710677, %v891_v4 }
 0x157   : > { %v3056_v33 = vpop.f32.mrf.mxu0  ;;  %v3058_v34 = vpop.f32.mrf.mxu1  ;;  %v1141_v8 = vadd.f32 1.0, %v2481_v49  ;;  %2510 = verf.f32 %v1027_v63  ;;  %v3107_v22 = vmul.f32 %v1139_v2, %v947_v0  ;;  %v3118_v32 = vmul.f32 0.5, %v889_v54 }
 0x158   : > { %v2483_v55 = vpop.eup %2482  ;;  %2512 = verf.f32 %v1029_v11  ;;  %v893_v28 = vadd.f32 %v3051_v29, %v3030_v42  ;;  %v782_v45 = vadd.f32 %v3056_v33, %v3032_v44  ;;  %v1031_v53 = vmul.f32 0.70710677, %v780_v20 }
 0x159   : > { %v3067_v46 = vpop.f32.mrf.mxu0  ;;  %v3069_v47 = vpop.f32.mrf.mxu1  ;;  %v1140_v12 = vadd.f32 1.0, %v2483_v55  ;;  %v3116_v36 = vmul.f32 %v1141_v8, %v3053_v30  ;;  %2514 = verf.f32 %v1028_v14  ;;  %v3132_v55 = vmul.f32 0.5, %v778_v57 }
 0x15a   : > { %v2485_v60 = vpop.eup %2484  ;;  %2516 = verf.f32 %v1030_v25  ;;  %v895_v63 = vadd.f32 %v3058_v34, %v3035_v48  ;;  %v1033_v2 = vmul.f32 0.70710677, %v893_v28  ;;  %v786_v57 = vadd.f32 %v3067_v46, %v3028_v39 }
 0x15b   : > { %v3081_v58 = vpop.f32.mrf.mxu0  ;;  %v3083_v59 = vpop.f32.mrf.mxu1  ;;  %v1143_v13 = vadd.f32 1.0, %v2485_v60  ;;  %v3123_v38 = vmul.f32 %v1140_v12, %v3060_v35  ;;  %v1032_v11 = vmul.f32 0.70710677, %v782_v45  ;;  %v3153_v34 = vadd.f32 %v3069_v47, %v3030_v42 }
 0x15c   : > { %v2487_v1 = vpop.eup %2486  ;;  %2518 = verf.f32 %v1031_v53  ;;  %v1035_v47 = vmul.f32 0.70710677, %v786_v57 }
 0x15d   : > { %v3092_v5 = vpop.f32.mrf.mxu0  ;;  %v3094_v6 = vpop.f32.mrf.mxu1  ;;  %v1142_v18 = vadd.f32 1.0, %v2487_v1  ;;  %v3125_v37 = vmul.f32 %v1143_v13, %v951_v41 }
 0x15e   : > { %v2489_v7 = vpop.eup %2488  ;;  %2520 = verf.f32 %v1033_v2 }
 0x15f   : > { %v3100_v15 = vpop.f32.mrf.mxu0  ;;  %v3102_v16 = vpop.f32.mrf.mxu1  ;;  %v1145_v23 = vadd.f32 1.0, %v2489_v7  ;;  %v3130_v30 = vmul.f32 %v1142_v18, %v3063_v40  ;;  %v3143_v40 = vmul.f32 0.5, %v891_v4  ;;  %v1283_v7 = vpack.c.bf16 %v3125_v37, %v3107_v22 }
 0x160   : > { %v2491_v17 = vpop.eup %2490  ;;  %2522 = verf.f32 %v1032_v11 }
 0x161   : > { %v2493_v21 = vpop.eup %2492  ;;  %v3111_v26 = vpop.f32.mrf.mxu0  ;;  %v1144_v54 = vadd.f32 1.0, %v2491_v17  ;;  %v3137_v35 = vmul.f32 %v1145_v23, %v3065_v43  ;;  %v3149_v43 = vmul.f32 0.5, %v780_v20 }
 0x162   : > { %v3113_v27 = vpop.f32.mrf.mxu1  ;;  %v2495_v31 = vpop.eup %2494  ;;  %v1146_v41 = vadd.f32 1.0, %v2493_v21  ;;  %v1034_v21 = vmul.f32 0.70710677, %v895_v63 }
 0x163   : > { %v2497_v0 = vpop.eup %2496  ;;  %v3134_v60 = vpop.f32.mrf.mxu0  ;;  %v1147_v1 = vadd.f32 1.0, %v2495_v31  ;;  %v1285_v46 = vpack.c.bf16 %v3137_v35, %v3116_v36  ;;  %v1208_v18 = vmul.f32 %v1144_v54, %v3071_v50  ;;  %v788_v31 = vadd.f32 %v3081_v58, %v3032_v44 }
 0x164   : > { %v2499_v49 = vpop.eup %2498  ;;  %v3141_v33 = vpop.f32.mrf.mxu1  ;;  %v1149_v8 = vadd.f32 1.0, %v2497_v0  ;;  %v1210_v20 = vmul.f32 %v1146_v41, %v3073_v51  ;;  %v3173_v50 = vadd.f32 %v3083_v59, %v3035_v48  ;;  %v1037_v58 = vmul.f32 0.70710677, %v3153_v34 }
 0x165   : > { %v2501_v29 = vpop.eup %2500  ;;  %v1148_v13 = vadd.f32 1.0, %v2499_v49  ;;  %v3155_v4 = vpop.f32.mrf.mxu0  ;;  %v3164_v25 = vmul.f32 %v1147_v1, %v3075_v52  ;;  %v3181_v49 = vmul.f32 0.5, %v893_v28  ;;  %2524 = verf.f32 %v1034_v21 }
 0x166   : > { %v2503_v12 = vpop.eup %2502  ;;  %v1150_v14 = vadd.f32 1.0, %v2501_v29  ;;  %v3161_v22 = vpop.f32.mrf.mxu1  ;;  %v3169_v0 = vmul.f32 %v1149_v8, %v3078_v56  ;;  %v790_v59 = vadd.f32 %v3092_v5, %v3028_v39  ;;  %2526 = verf.f32 %v1035_v47 }
 0x167   : > { %v2505_v17 = vpop.eup %2504  ;;  %v1151_v36 = vadd.f32 1.0, %v2503_v12  ;;  %v3176_v37 = vmul.f32 %v1148_v13, %v3085_v61  ;;  %v3184_v54 = vpop.f32.mrf.mxu0  ;;  %v3190_v61 = vmul.f32 0.5, %v782_v45  ;;  %v1284_v28 = vpack.c.bf16 %v1208_v18, %v3123_v38 }
 0x168   : > { %v2507_v23 = vpop.eup %2506  ;;  %v3179_v52 = vmul.f32 %v1150_v14, %v3087_v62  ;;  %v1153_v53 = vadd.f32 1.0, %v2505_v17  ;;  %v3188_v35 = vpop.f32.mrf.mxu1  ;;  %v1036_v62 = vmul.f32 0.70710677, %v788_v31  ;;  %v1038_v8 = vmul.f32 0.70710677, %v3173_v50 }
 0x169   : > { %v2509_v51 = vpop.eup %2508  ;;  %v1152_v29 = vadd.f32 1.0, %v2507_v23  ;;  %v3194_v1 = vmul.f32 %v1151_v36, %v3089_v3  ;;  %v1286_v11 = vpack.c.bf16 %v1210_v20, %v3130_v30  ;;  %v3198_v5 = vmul.f32 0.5, %v895_v63  ;;  %1603 = vmatprep.mubr.bf16.mxu0 %v1284_v28  ;;  %v3202_v14 = vpop.f32.mrf.mxu0 }
 0x16a   : > { %v2511_v56 = vpop.eup %2510  ;;  %v1154_v2 = vadd.f32 1.0, %v2509_v51  ;;  %2528 = verf.f32 %v1037_v58  ;;  %v903_v45 = vadd.f32 %v3094_v6, %v3030_v42  ;;  %v3205_v38 = vmul.f32 %v1153_v53, %v3096_v9  ;;  %1604 = vmatmul.mubr.bf16.vlgmr.msra.gmra.mxu0 %v1283_v7  ;;  %v3210_v63 = vpop.f32.mrf.mxu1 }
 0x16b   : > { %v2513_v41 = vpop.eup %2512  ;;  %v1155_v13 = vadd.f32 1.0, %v2511_v56  ;;  %v1216_v3 = vmul.f32 %v1152_v29, %v3098_v10  ;;  %v1039_v17 = vmul.f32 0.70710677, %v790_v59  ;;  %v792_v30 = vadd.f32 %v3100_v15, %v3032_v44  ;;  %1700 = vmatprep.mubr.bf16.mxu1 %v1286_v11  ;;  %v3227_v36 = vpop.f32.mrf.mxu0 }
 0x16c   : > { %v2515_v12 = vpop.eup %2514  ;;  %v1157_v20 = vadd.f32 1.0, %v2513_v41  ;;  %v3212_v21 = vmul.f32 0.5, %v786_v57  ;;  %2530 = verf.f32 %v1036_v62  ;;  %v905_v6 = vadd.f32 %v3102_v16, %v3035_v48  ;;  %1701 = vmatmul.mubr.bf16.vlgmr.msra.gmra.mxu1 %v1285_v46 }
 0x16d   : > { %v2517_v18 = vpop.eup %2516  ;;  %v1218_v9 = vmul.f32 %v1154_v2, %v3104_v19  ;;  %v1156_v10 = vadd.f32 1.0, %v2515_v12  ;;  %2532 = verf.f32 %v1038_v8  ;;  %v796_v15 = vadd.f32 %v3111_v26, %v3028_v39  ;;  %v3231_v26 = vpop.f32.mrf.mxu1 }
 0x16e   : > { %v3220_v7 = vmul.f32 %v1155_v13, %v3109_v24  ;;  %v3223_v23 = vmul.f32 0.5, %v3153_v34  ;;  %v1041_v57 = vmul.f32 0.70710677, %v903_v45  ;;  %v909_v47 = vadd.f32 %v3113_v27, %v3030_v42  ;;  %v2519_v16 = vpop.eup %2518  ;;  %v3250_v2 = vpop.f32.mrf.mxu0 }
 0x16f   : > { %v1158_v46 = vadd.f32 1.0, %v2517_v18  ;;  %2534 = verf.f32 %v1039_v17  ;;  %v1040_v19 = vmul.f32 0.70710677, %v792_v30  ;;  %v798_v51 = vadd.f32 %v3134_v60, %v3032_v44  ;;  %v2521_v56 = vpop.eup %2520 }
 0x170   : > { %v3234_v24 = vmul.f32 %v1157_v20, %v3118_v32  ;;  %v3236_v34 = vmul.f32 0.5, %v788_v31  ;;  %v1042_v58 = vmul.f32 0.70710677, %v905_v6  ;;  %v911_v27 = vadd.f32 %v3141_v33, %v3035_v48  ;;  %v2523_v28 = vpop.eup %2522 }
 0x171   : > { %v3241_v53 = vmul.f32 %v1156_v10, %v3132_v55  ;;  %v3244_v29 = vmul.f32 0.5, %v3173_v50  ;;  %v3246_v62 = vmul.f32 0.5, %v790_v59  ;;  %v1043_v60 = vmul.f32 0.70710677, %v796_v15  ;;  %v3257_v50 = vpop.f32.mrf.mxu1 }
 0x172   : > { %v1159_v41 = vadd.f32 1.0, %v2519_v16  ;;  %v3248_v32 = vmul.f32 0.5, %v903_v45  ;;  %2536 = verf.f32 %v1041_v57  ;;  %v1045_v31 = vmul.f32 0.70710677, %v909_v47  ;;  %v2525_v59 = vpop.eup %2524  ;;  %v811_v57 = vpop.f32.mrf.mxu0 }
 0x173   : > { %v3253_v33 = vmul.f32 %v1158_v46, %v3143_v40  ;;  %v3255_v8 = vmul.f32 0.5, %v792_v30  ;;  %2538 = verf.f32 %v1040_v19  ;;  %v1044_v55 = vmul.f32 0.70710677, %v798_v51  ;;  %v2527_v45 = vpop.eup %2526 }
 0x174   : > { %v1161_v11 = vadd.f32 1.0, %v2521_v56  ;;  %2540 = verf.f32 %v1042_v58  ;;  %v1046_v12 = vmul.f32 0.70710677, %v911_v27  ;;  %v1288_v13 = vpack.c.bf16 %v1216_v3, %v3176_v37 }
 0x175   : > { %v1160_v17 = vadd.f32 1.0, %v2523_v28  ;;  %2542 = verf.f32 %v1043_v60  ;;  %v800_v18 = vadd.f32 %v3155_v4, %v3028_v39  ;;  %v1290_v40 = vpack.c.bf16 %v1218_v9, %v3179_v52  ;;  %v924_v52 = vpop.f32.mrf.mxu1  ;;  %v3288_v28 = vpop.f32.mrf.mxu0 }
 0x176   : > { %v3264_v30 = vmul.f32 %v1159_v41, %v3149_v43  ;;  %v3266_v20 = vmul.f32 0.5, %v905_v6  ;;  %2544 = verf.f32 %v1045_v31  ;;  %v913_v10 = vadd.f32 %v3161_v22, %v3030_v42  ;;  %1611 = vmatprep.mubr.bf16.mxu0 %v1288_v13 }
 0x177   : > { %v2529_v37 = vpop.eup %2528  ;;  %v1162_v3 = vadd.f32 1.0, %v2525_v59  ;;  %v3270_v16 = vmul.f32 0.5, %v796_v15  ;;  %2546 = verf.f32 %v1044_v55  ;;  %v802_v4 = vadd.f32 %v3184_v54, %v3032_v44  ;;  %1708 = vmatprep.mubr.bf16.mxu1 %v1290_v40 }
 0x178   : > { %v3275_v43 = vmul.f32 %v1161_v11, %v3181_v49  ;;  %v1163_v6 = vadd.f32 1.0, %v2527_v45  ;;  %v3277_v9 = vmul.f32 0.5, %v909_v47  ;;  %2548 = verf.f32 %v1046_v12  ;;  %v817_v12 = vpop.f32.mrf.mxu0 }
 0x179   : > { %v2531_v22 = vpop.eup %2530  ;;  %v1224_v46 = vmul.f32 %v1160_v17, %v3190_v61  ;;  %v3280_v19 = vmul.f32 0.5, %v798_v51  ;;  %v1047_v15 = vmul.f32 0.70710677, %v800_v18  ;;  %v1287_v58 = vpack.c.bf16 %v3194_v1, %v3164_v25  ;;  %v3299_v1 = vpop.f32.mrf.mxu1 }
 0x17a   : > { %v2533_v56 = vpop.eup %2532  ;;  %v1165_v54 = vadd.f32 1.0, %v2529_v37  ;;  %v1049_v60 = vmul.f32 0.70710677, %v913_v10  ;;  %v915_v49 = vadd.f32 %v3188_v35, %v3035_v48  ;;  %v1289_v47 = vpack.c.bf16 %v3205_v38, %v3169_v0 }
 0x17b   : > { %v3291_v41 = vmul.f32 %v1162_v3, %v3198_v5  ;;  %v3293_v61 = vmul.f32 0.5, %v911_v27  ;;  %v1048_v51 = vmul.f32 0.70710677, %v802_v4  ;;  %v3297_v25 = vadd.f32 %v3202_v14, %v3028_v39  ;;  %1612 = vmatmul.mubr.bf16.gmra.mxu0 %v1287_v58 }
 0x17c   : > { %v2535_v31 = vpop.eup %2534  ;;  %v3302_v35 = vmul.f32 %v1163_v6, %v3212_v21  ;;  %v1164_v0 = vadd.f32 1.0, %v2531_v22  ;;  %v3304_v38 = vmul.f32 0.5, %v800_v18  ;;  %v3308_v5 = vadd.f32 %v3210_v63, %v3030_v42  ;;  %1709 = vmatmul.mubr.bf16.gmra.mxu1 %v1289_v47  ;;  %v930_v18 = vpop.f32.mrf.mxu1 }
 0x17d   : > { %v1166_v27 = vadd.f32 1.0, %v2533_v56  ;;  %2550 = verf.f32 %v1047_v15  ;;  %v3310_v55 = vmul.f32 0.5, %v913_v10  ;;  %v3314_v14 = vadd.f32 %v3227_v36, %v3032_v44 }
 0x17e   : > { %v3317_v59 = vmul.f32 %v1165_v54, %v3223_v23  ;;  %2552 = verf.f32 %v1049_v60  ;;  %v3319_v21 = vmul.f32 0.5, %v802_v4  ;;  %v1050_v11 = vmul.f32 0.70710677, %v915_v49  ;;  %v932_v54 = vpop.f32.mrf.mxu1 }
 0x17f   : > { %v2537_v13 = vpop.eup %2536  ;;  %v1167_v63 = vadd.f32 1.0, %v2535_v31  ;;  %2554 = verf.f32 %v1048_v51  ;;  %v1051_v45 = vmul.f32 0.70710677, %v3297_v25  ;;  %v3323_v17 = vadd.f32 %v811_v57, %v3032_v44 }
 0x180   : > { %v2539_v40 = vpop.eup %2538  ;;  %v1053_v36 = vmul.f32 0.70710677, %v3308_v5  ;;  %v921_v23 = vadd.f32 %v3231_v26, %v3035_v48  ;;  %v3329_v10 = vadd.f32 %v924_v52, %v3035_v48  ;;  %v1292_v37 = vpack.c.bf16 %v1224_v46, %v3241_v53  ;;  %v819_v53 = vpop.f32.mrf.mxu0 }
 0x181   : > { %v2541_v3 = vpop.eup %2540  ;;  %v3333_v4 = vmul.f32 %v1164_v0, %v3236_v34  ;;  %v3336_v6 = vmul.f32 %v1166_v27, %v3244_v29  ;;  %v3338_v57 = vmul.f32 0.5, %v915_v49  ;;  %v1052_v22 = vmul.f32 0.70710677, %v3314_v14 }
 0x182   : > { %v2543_v15 = vpop.eup %2542  ;;  %v1169_v58 = vadd.f32 1.0, %v2537_v13  ;;  %2556 = verf.f32 %v1050_v11  ;;  %v810_v26 = vadd.f32 %v3250_v2, %v3028_v39  ;;  %v1056_v52 = vmul.f32 0.70710677, %v3323_v17  ;;  %1619 = vmatprep.mubr.bf16.mxu0 %v1292_v37 }
 0x183   : > { %v2545_v46 = vpop.eup %2544  ;;  %v3345_v34 = vmul.f32 %v1167_v63, %v3246_v62  ;;  %v1168_v29 = vadd.f32 1.0, %v2539_v40  ;;  %2558 = verf.f32 %v1051_v45  ;;  %v1058_v56 = vmul.f32 0.70710677, %v3329_v10  ;;  %v821_v63 = vpop.f32.mrf.mxu0 }
 0x184   : > { %v2547_v60 = vpop.eup %2546  ;;  %v1170_v49 = vadd.f32 1.0, %v2541_v3  ;;  %2560 = verf.f32 %v1053_v36  ;;  %v1054_v47 = vmul.f32 0.70710677, %v921_v23  ;;  %v1294_v2 = vpack.c.bf16 %v3291_v41, %v3253_v33 }
 0x185   : > { %v2549_v51 = vpop.eup %2548  ;;  %v1171_v31 = vadd.f32 1.0, %v2543_v15  ;;  %2562 = verf.f32 %v1052_v22  ;;  %v923_v0 = vadd.f32 %v3257_v50, %v3030_v42  ;;  %v1291_v62 = vpack.c.bf16 %v3264_v30, %v3220_v7  ;;  %v934_v50 = vpop.f32.mrf.mxu1 }
 0x186   : > { %v3355_v27 = vmul.f32 %v1169_v58, %v3248_v32  ;;  %v1055_v11 = vmul.f32 0.70710677, %v810_v26  ;;  %2564 = verf.f32 %v1056_v52  ;;  %1716 = vmatprep.mubr.bf16.mxu1 %v1294_v2  ;;  %v1293_v13 = vpack.c.bf16 %v3275_v43, %v3234_v24  ;;  %v825_v22 = vpop.f32.mrf.mxu0 }
 0x187   : > { %v1173_v33 = vadd.f32 1.0, %v2545_v46  ;;  %v1172_v41 = vadd.f32 1.0, %v2547_v60  ;;  %2566 = verf.f32 %v1058_v56  ;;  %1620 = vmatmul.mubr.bf16.gmra.mxu0 %v1291_v62  ;;  %v3360_v45 = vadd.f32 %v817_v12, %v3032_v44 }
 0x188   : > { %v1232_v7 = vmul.f32 %v1168_v29, %v3255_v8  ;;  %v1174_v30 = vadd.f32 1.0, %v2549_v51  ;;  %2568 = verf.f32 %v1054_v47  ;;  %1717 = vmatmul.mubr.bf16.gmra.mxu1 %v1293_v13  ;;  %v3364_v32 = vadd.f32 %v930_v18, %v3035_v48 }
 0x189   : > { %v1234_v40 = vmul.f32 %v1170_v49, %v3266_v20  ;;  %v3368_v24 = vmul.f32 %v1171_v31, %v3270_v16  ;;  %v3371_v43 = vmul.f32 0.5, %v3314_v14  ;;  %v1057_v36 = vmul.f32 0.70710677, %v923_v0 }
 0x18a   : > { %v2551_v12 = vpop.eup %2550  ;;  %v3373_v37 = vmul.f32 0.5, %v921_v23  ;;  %v3375_v3 = vmul.f32 0.5, %v810_v26  ;;  %2570 = verf.f32 %v1055_v11  ;;  %v1060_v8 = vmul.f32 0.70710677, %v3360_v45  ;;  %v3388_v23 = vpop.f32.mrf.mxu1 }
 0x18b   : > { %v2553_v18 = vpop.eup %2552  ;;  %v3379_v15 = vmul.f32 %v1173_v33, %v3277_v9  ;;  %v3382_v20 = vmul.f32 %v1172_v41, %v3280_v19  ;;  %v1062_v16 = vmul.f32 0.70710677, %v3364_v32  ;;  %v3386_v14 = vadd.f32 %v821_v63, %v3032_v44 }
 0x18c   : > { %v2555_v58 = vpop.eup %2554  ;;  %v3391_v26 = vmul.f32 %v1174_v30, %v3293_v61  ;;  %v3394_v52 = vadd.f32 %v819_v53, %v3028_v39  ;;  %v3397_v9 = vadd.f32 %v934_v50, %v3035_v48  ;;  %v1296_v19 = vpack.c.bf16 %v1232_v7, %v3333_v4  ;;  %v827_v53 = vpop.f32.mrf.mxu0 }
 0x18d   : > { %v1175_v46 = vadd.f32 1.0, %v2551_v12  ;;  %v3400_v29 = vmul.f32 0.5, %v923_v0  ;;  %2572 = verf.f32 %v1057_v36  ;;  %v3403_v56 = vadd.f32 %v932_v54, %v3030_v42  ;;  %v940_v51 = vpop.f32.mrf.mxu1 }
 0x18e   : > { %v1177_v60 = vadd.f32 1.0, %v2553_v18  ;;  %v3406_v49 = vmul.f32 0.5, %v3323_v17  ;;  %v3410_v61 = vadd.f32 %v3288_v28, %v3028_v39  ;;  %2574 = verf.f32 %v1060_v8  ;;  %1627 = vmatprep.mubr.bf16.mxu0 %v1296_v19  ;;  %v829_v7 = vpop.f32.mrf.mxu0 }
 0x18f   : > { %v2557_v47 = vpop.eup %2556  ;;  %v1176_v4 = vadd.f32 1.0, %v2555_v58  ;;  %v3414_v2 = vadd.f32 %v3299_v1, %v3030_v42  ;;  %2576 = verf.f32 %v1062_v16  ;;  %v1064_v54 = vmul.f32 0.70710677, %v3386_v14 }
 0x190   : > { %v2559_v31 = vpop.eup %2558  ;;  %v1063_v17 = vmul.f32 0.70710677, %v3394_v52  ;;  %v1066_v0 = vmul.f32 0.70710677, %v3397_v9  ;;  %v1298_v28 = vpack.c.bf16 %v1234_v40, %v3336_v6  ;;  %v3421_v62 = vadd.f32 %v825_v22, %v3028_v39 }
 0x191   : > { %v3423_v11 = vpop.eup %2560  ;;  %v994_v13 = vmul.f32 0.5, %v3329_v10  ;;  %v1065_v1 = vmul.f32 0.70710677, %v3403_v56  ;;  %2578 = verf.f32 %v1064_v54  ;;  %v1295_v63 = vpack.c.bf16 %v3345_v34, %v3302_v35  ;;  %v942_v34 = vpop.f32.mrf.mxu1 }
 0x192   : > { %v2563_v33 = vpop.eup %2562  ;;  %v3430_v41 = vmul.f32 %v1175_v46, %v3304_v38  ;;  %v1178_v50 = vadd.f32 1.0, %v2557_v47  ;;  %v1059_v6 = vmul.f32 0.70710677, %v3410_v61  ;;  %2580 = verf.f32 %v1066_v0  ;;  %1724 = vmatprep.mubr.bf16.mxu1 %v1298_v28 }
 0x193   : > { %v2565_v30 = vpop.eup %2564  ;;  %v3434_v40 = vmul.f32 %v1177_v60, %v3310_v55  ;;  %v1240_v10 = vmul.f32 %v1176_v4, %v3319_v21  ;;  %v3437_v36 = vadd.f32 1.0, %v2559_v31  ;;  %v1061_v35 = vmul.f32 0.70710677, %v3414_v2  ;;  %1628 = vmatmul.mubr.bf16.gmra.mxu0 %v1295_v63  ;;  %v944_v4 = vpop.f32.mrf.mxu1 }
 0x194   : > { %v2567_v38 = vpop.eup %2566  ;;  %2582 = verf.f32 %v1063_v17  ;;  %v1067_v12 = vmul.f32 0.70710677, %v3421_v62  ;;  %v1297_v8 = vpack.c.bf16 %v3355_v27, %v3317_v59  ;;  %v3444_v22 = vadd.f32 %v827_v53, %v3032_v44  ;;  %v831_v27 = vpop.f32.mrf.mxu0 }
 0x195   : > { %v2569_v55 = vpop.eup %2568  ;;  %v1180_v18 = vadd.f32 1.0, %v2563_v33  ;;  %2584 = verf.f32 %v1065_v1  ;;  %v3447_v21 = vadd.f32 %v940_v51, %v3035_v48  ;;  %v3450_v16 = vadd.f32 %v829_v7, %v3028_v39 }
 0x196   : > { %v1242_v58 = vmul.f32 %v1178_v50, %v3338_v57  ;;  %2586 = verf.f32 %v1059_v6  ;;  %1725 = vmatmul.mubr.bf16.gmra.mxu1 %v1297_v8  ;;  %v1068_v19 = vmul.f32 0.70710677, %v3444_v22  ;;  %v3455_v59 = vadd.f32 %v942_v34, %v3030_v42 }
 0x197   : > { %v2571_v46 = vpop.eup %2570  ;;  %v1184_v60 = vadd.f32 1.0, %v2565_v30  ;;  %v1186_v53 = vadd.f32 1.0, %v2567_v38  ;;  %2588 = verf.f32 %v1061_v35  ;;  %v1070_v47 = vmul.f32 0.70710677, %v3447_v21 }
 0x198   : > { %v1182_v54 = vadd.f32 1.0, %v2569_v55  ;;  %2590 = verf.f32 %v1067_v12  ;;  %v3460_v39 = vadd.f32 %v3388_v23, %v3030_v42  ;;  %v1071_v57 = vmul.f32 0.70710677, %v3450_v16 }
 0x199   : > { %v1244_v51 = vmul.f32 %v1180_v18, %v3371_v43  ;;  %2592 = verf.f32 %v1068_v19  ;;  %v1073_v31 = vmul.f32 0.70710677, %v3455_v59  ;;  %v3466_v17 = vadd.f32 %v831_v27, %v3032_v44 }
 0x19a   : > { %v2573_v0 = vpop.eup %2572  ;;  %v1183_v28 = vadd.f32 1.0, %v2571_v46  ;;  %2594 = verf.f32 %v1070_v47  ;;  %v3469_v1 = vadd.f32 %v944_v4, %v3035_v48  ;;  %v1300_v63 = vpack.c.bf16 %v1240_v10, %v3382_v20 }
 0x19b   : > { %v2575_v42 = vpop.eup %2574  ;;  %v1248_v23 = vmul.f32 %v1184_v60, %v3406_v49  ;;  %v1250_v33 = vmul.f32 %v1186_v53, %v994_v13  ;;  %2596 = verf.f32 %v1071_v57  ;;  %v1072_v43 = vmul.f32 0.70710677, %v3466_v17 }
 0x19c   : > { %v2577_v50 = vpop.eup %2576  ;;  %v1000_v6 = vmul.f32 0.5, %v3386_v14  ;;  %v1069_v44 = vmul.f32 0.70710677, %v3460_v39  ;;  %2598 = verf.f32 %v1073_v31  ;;  %v1074_v7 = vmul.f32 0.70710677, %v3469_v1  ;;  %1635 = vmatprep.mubr.bf16.mxu0 %v1300_v63 }
 0x19d   : > { %v1246_v48 = vmul.f32 %v1182_v54, %v3373_v37  ;;  %v1185_v30 = vadd.f32 1.0, %v2573_v0  ;;  %2600 = verf.f32 %v1072_v43  ;;  %v1302_v20 = vpack.c.bf16 %v1242_v58, %v3391_v26 }
 0x19e   : > { %v2579_v49 = vpop.eup %2578  ;;  %v1188_v13 = vadd.f32 1.0, %v2575_v42  ;;  %2602 = verf.f32 %v1074_v7  ;;  %v1299_v10 = vpack.c.bf16 %v3430_v41, %v3368_v24  ;;  %v1301_v14 = vpack.c.bf16 %v3434_v40, %v3379_v15 }
 0x19f   : > { %v2581_v35 = vpop.eup %2580  ;;  %v1190_v34 = vadd.f32 1.0, %v2577_v50  ;;  %v1192_v38 = vadd.f32 1.0, %v2579_v49  ;;  %1732 = vmatprep.mubr.bf16.mxu1 %v1302_v20  ;;  %v1304_v12 = vpack.c.bf16 %v1248_v23, %v1244_v51  ;;  %v1306_v8 = vpack.c.bf16 %v1250_v33, %v1246_v48 }
 0x1a0   : > { %v1181_v37 = vadd.f32 1.0, %v3423_v11  ;;  %v1002_v55 = vmul.f32 0.5, %v3397_v9  ;;  %v1194_v26 = vadd.f32 1.0, %v2581_v35  ;;  %2604 = verf.f32 %v1069_v44  ;;  %1636 = vmatmul.mubr.bf16.gmra.mxu0 %v1299_v10  ;;  %1733 = vmatmul.mubr.bf16.gmra.mxu1 %v1301_v14 }
 0x1a1   : > { %v2583_v18 = vpop.eup %2582  ;;  %v987_v24 = vmul.f32 0.5, %v3297_v25  ;;  %v996_v41 = vmul.f32 0.5, %v3360_v45  ;;  %v998_v15 = vmul.f32 0.5, %v3364_v32  ;;  %v1256_v40 = vmul.f32 %v1192_v38, %v1000_v6  ;;  %1643 = vmatprep.mubr.bf16.mxu0 %v1304_v12  ;;  %1740 = vmatprep.mubr.bf16.mxu1 %v1306_v8 }
 0x1a2   : > { %v2585_v58 = vpop.eup %2584  ;;  %v989_v19 = vmul.f32 0.5, %v3308_v5  ;;  %v1247_v11 = vmul.f32 %v1183_v28, %v3375_v3  ;;  %v1249_v9 = vmul.f32 %v1185_v30, %v3400_v29  ;;  %v1258_v27 = vmul.f32 %v1194_v26, %v1002_v55 }
 0x1a3   : > { %v2587_v46 = vpop.eup %2586  ;;  %v1252_v60 = vmul.f32 %v1188_v13, %v996_v41  ;;  %v1254_v53 = vmul.f32 %v1190_v34, %v998_v15  ;;  %v1243_v25 = vmul.f32 %v3437_v36, %v987_v24  ;;  %v1191_v32 = vadd.f32 1.0, %v2583_v18 }
 0x1a4   : > { %v2589_v47 = vpop.eup %2588  ;;  %v1245_v45 = vmul.f32 %v1181_v37, %v989_v19  ;;  %v1193_v54 = vadd.f32 1.0, %v2585_v58  ;;  %v1187_v3 = vadd.f32 1.0, %v2587_v46  ;;  %v999_v29 = vmul.f32 0.5, %v3394_v52 }
 0x1a5   : > { %v2591_v4 = vpop.eup %2590  ;;  %v1308_v57 = vpack.c.bf16 %v1256_v40, %v1252_v60  ;;  %v1310_v51 = vpack.c.bf16 %v1258_v27, %v1254_v53  ;;  %v1303_v0 = vpack.c.bf16 %v1247_v11, %v1243_v25  ;;  %v1189_v28 = vadd.f32 1.0, %v2589_v47 }
 0x1a6   : > { %v2593_v31 = vpop.eup %2592  ;;  %v1305_v5 = vpack.c.bf16 %v1249_v9, %v1245_v45  ;;  %v1001_v42 = vmul.f32 0.5, %v3403_v56  ;;  %v995_v33 = vmul.f32 0.5, %v3410_v61  ;;  %v997_v43 = vmul.f32 0.5, %v3414_v2 }
 0x1a7   : > { %v2595_v63 = vpop.eup %2594  ;;  %v1255_v50 = vmul.f32 %v1191_v32, %v999_v29  ;;  %v1196_v44 = vadd.f32 1.0, %v2593_v31  ;;  %v1004_v48 = vmul.f32 0.5, %v3444_v22  ;;  %v1008_v49 = vmul.f32 0.5, %v3466_v17 }
 0x1a8   : > { %v2597_v23 = vpop.eup %2596  ;;  %1644 = vmatmul.mubr.bf16.gmra.mxu0 %v1303_v0  ;;  %1741 = vmatmul.mubr.bf16.gmra.mxu1 %v1305_v5  ;;  %v1257_v6 = vmul.f32 %v1193_v54, %v1001_v42  ;;  %v1198_v30 = vadd.f32 1.0, %v2595_v63  ;;  %v1251_v20 = vmul.f32 %v1187_v3, %v995_v33  ;;  %v1253_v56 = vmul.f32 %v1189_v28, %v997_v43 }
 0x1a9   : > { %v2599_v36 = vpop.eup %2598  ;;  %1651 = vmatprep.mubr.bf16.mxu0 %v1308_v57  ;;  %1748 = vmatprep.mubr.bf16.mxu1 %v1310_v51  ;;  %v1006_v13 = vmul.f32 0.5, %v3447_v21  ;;  %v1010_v10 = vmul.f32 0.5, %v3469_v1  ;;  %v1260_v35 = vmul.f32 %v1196_v44, %v1004_v48  ;;  %v1199_v37 = vadd.f32 1.0, %v2597_v23 }
 0x1aa   : > { %v2601_v7 = vpop.eup %2600  ;;  %v1307_v38 = vpack.c.bf16 %v1255_v50, %v1251_v20  ;;  %v1309_v12 = vpack.c.bf16 %v1257_v6, %v1253_v56  ;;  %v1201_v22 = vadd.f32 1.0, %v2599_v36  ;;  %v1007_v26 = vmul.f32 0.5, %v3450_v16 }
 0x1ab   : > { %v2603_v52 = vpop.eup %2602  ;;  %v1200_v61 = vadd.f32 1.0, %v2601_v7  ;;  %v1262_v8 = vmul.f32 %v1198_v30, %v1006_v13  ;;  %v1195_v24 = vadd.f32 1.0, %v2591_v4  ;;  %v1009_v41 = vmul.f32 0.5, %v3455_v59 }
 0x1ac   : > { %v1202_v2 = vadd.f32 1.0, %v2603_v52  ;;  %v1003_v1 = vmul.f32 0.5, %v3421_v62  ;;  %v1005_v15 = vmul.f32 0.5, %v3460_v39  ;;  %v1263_v40 = vmul.f32 %v1199_v37, %v1007_v26  ;;  %v3507_v62 = vld [vmem:[%s3604_s4] ss:$0 sm:$0xff] }
 0x1ad   : > { %v2605_v14 = vpop.eup %2604  ;;  %v1264_v34 = vmul.f32 %v1200_v61, %v1008_v49  ;;  %v1265_v58 = vmul.f32 %v1201_v22, %v1009_v41 }
 0x1ae   : > { %v1266_v55 = vmul.f32 %v1202_v2, %v1010_v10  ;;  %v1197_v17 = vadd.f32 1.0, %v2605_v14  ;;  %v1259_v19 = vmul.f32 %v1195_v24, %v1003_v1 }
 0x1af   : > { %v1312_v18 = vpack.c.bf16 %v1264_v34, %v1260_v35 }
 0x1b0   : > { %1652 = vmatmul.mubr.bf16.gmra.mxu0 %v1307_v38  ;;  %1749 = vmatmul.mubr.bf16.gmra.mxu1 %v1309_v12  ;;  %v1314_v21 = vpack.c.bf16 %v1266_v55, %v1262_v8  ;;  %v1261_v11 = vmul.f32 %v1197_v17, %v1005_v15  ;;  %v1311_v9 = vpack.c.bf16 %v1263_v40, %v1259_v19 }
 0x1b1   : > { %1659 = vmatprep.mubr.bf16.mxu0 %v1312_v18 }
 0x1b2   : > { %1756 = vmatprep.mubr.bf16.mxu1 %v1314_v21  ;;  %v1313_v16 = vpack.c.bf16 %v1265_v58, %v1261_v11 }
 0x1b8   : > { %1660 = vmatmul.mubr.bf16.gmra.mxu0 %v1311_v9  ;;  %1757 = vmatmul.mubr.bf16.gmra.mxu1 %v1313_v16 }
 0x22a   : > { %v2176_v27 = vpop.f32.mrf.mxu0 }
 0x22c   : > { %v2240_v59 = vpop.f32.mrf.mxu1  ;;  %v2177_v46 = vpop.f32.mrf.mxu0 }
 0x22d   : > { %v2178_v60 = vadd.f32 %v2177_v46, %v2176_v27 }
 0x22e   : > { %v2241_v53 = vpop.f32.mrf.mxu1  ;;  %v2179_v25 = vpop.f32.mrf.mxu0 }
 0x22f   : > { %v2242_v47 = vadd.f32 %v2241_v53, %v2240_v59 }
 0x230   : > { %v2243_v39 = vpop.f32.mrf.mxu1  ;;  %v2180_v4 = vpop.f32.mrf.mxu0 }
 0x231   : > { %v1703_v45 = vadd.f32 %v2242_v47, %v2178_v60  ;;  %v2181_v32 = vadd.f32 %v2180_v4, %v2179_v25 }
 0x232   : > { %v2244_v54 = vpop.f32.mrf.mxu1 }
 0x233   : > { %v1823_v57 = vadd.f32 %v3507_v62, %v1703_v45  ;;  %v2245_v51 = vadd.f32 %v2244_v54, %v2243_v39 }
 0x235   : > { %1839 = vst [vmem:[%s3512_s30] sm:$0xff] %v1823_v57  ;;  %v1706_v31 = vadd.f32 %v2245_v51, %v2181_v32 }
 0x237   : > { %v1824_v0 = vadd.f32 %v3507_v62, %v1706_v31 }
 0x239   : > { %1840 = vst [vmem:[%s3512_s30 + $0x8] sm:$0xff] %v1824_v0 }
 0x23b   : > { %v2182_v5 = vpop.f32.mrf.mxu0 }
 0x23c   : > { %v2246_v63 = vpop.f32.mrf.mxu1 }
 0x23d   : > { %v2183_v3 = vpop.f32.mrf.mxu0 }
 0x23e   : > { %v2184_v28 = vadd.f32 %v2183_v3, %v2182_v5  ;;  %v2247_v29 = vpop.f32.mrf.mxu1 }
 0x23f   : > { %v2248_v42 = vadd.f32 %v2247_v29, %v2246_v63  ;;  %v2185_v23 = vpop.f32.mrf.mxu0 }
 0x240   : > { %v2249_v33 = vpop.f32.mrf.mxu1 }
 0x241   : > { %v1711_v36 = vadd.f32 %v2248_v42, %v2184_v28  ;;  %v2186_v43 = vpop.f32.mrf.mxu0 }
 0x242   : > { %v2187_v50 = vadd.f32 %v2186_v43, %v2185_v23  ;;  %v2250_v6 = vpop.f32.mrf.mxu1 }
 0x243   : > { %v1825_v44 = vadd.f32 %v3507_v62, %v1711_v36  ;;  %v2251_v7 = vadd.f32 %v2250_v6, %v2249_v33 }
 0x245   : > { %1841 = vst [vmem:[%s3512_s30 + $0x10] sm:$0xff] %v1825_v44  ;;  %v1714_v48 = vadd.f32 %v2251_v7, %v2187_v50 }
 0x247   : > { %v1826_v30 = vadd.f32 %v3507_v62, %v1714_v48  ;;  %v2188_v52 = vpop.f32.mrf.mxu0 }
 0x248   : > { %v2252_v20 = vpop.f32.mrf.mxu1 }
 0x249   : > { %1842 = vst [vmem:[%s3512_s30 + $0x18] sm:$0xff] %v1826_v30  ;;  %v2189_v56 = vpop.f32.mrf.mxu0 }
 0x24a   : > { %v2190_v49 = vadd.f32 %v2189_v56, %v2188_v52  ;;  %v2253_v61 = vpop.f32.mrf.mxu1 }
 0x24b   : > { %v2254_v13 = vadd.f32 %v2253_v61, %v2252_v20  ;;  %v2191_v10 = vpop.f32.mrf.mxu0 }
 0x24c   : > { %v2255_v2 = vpop.f32.mrf.mxu1 }
 0x24d   : > { %v1719_v14 = vadd.f32 %v2254_v13, %v2190_v49  ;;  %v2192_v35 = vpop.f32.mrf.mxu0 }
 0x24e   : > { %v2193_v34 = vadd.f32 %v2192_v35, %v2191_v10  ;;  %v2256_v38 = vpop.f32.mrf.mxu1 }
 0x24f   : > { %v1827_v12 = vadd.f32 %v3507_v62, %v1719_v14  ;;  %v2257_v8 = vadd.f32 %v2256_v38, %v2255_v2 }
 0x251   : > { %1843 = vst [vmem:[%s3512_s30 + $0x20] sm:$0xff] %v1827_v12  ;;  %v1722_v37 = vadd.f32 %v2257_v8, %v2193_v34 }
 0x253   : > { %v1828_v22 = vadd.f32 %v3507_v62, %v1722_v37  ;;  %v2194_v55 = vpop.f32.mrf.mxu0 }
 0x255   : > { %1844 = vst [vmem:[%s3512_s30 + $0x28] sm:$0xff] %v1828_v22  ;;  %v2195_v26 = vpop.f32.mrf.mxu0 }
 0x256   : > { %v2258_v18 = vpop.f32.mrf.mxu1  ;;  %v2196_v24 = vadd.f32 %v2195_v26, %v2194_v55 }
 0x257   : > { %v2197_v17 = vpop.f32.mrf.mxu0 }
 0x258   : > { %v2259_v41 = vpop.f32.mrf.mxu1 }
 0x259   : > { %v2260_v21 = vadd.f32 %v2259_v41, %v2258_v18  ;;  %v2198_v1 = vpop.f32.mrf.mxu0 }
 0x25a   : > { %v2261_v15 = vpop.f32.mrf.mxu1  ;;  %v2199_v58 = vadd.f32 %v2198_v1, %v2197_v17 }
 0x25b   : > { %v1727_v40 = vadd.f32 %v2260_v21, %v2196_v24 }
 0x25c   : > { %v2262_v19 = vpop.f32.mrf.mxu1 }
 0x25d   : > { %v1829_v11 = vadd.f32 %v3507_v62, %v1727_v40  ;;  %v2263_v9 = vadd.f32 %v2262_v19, %v2261_v15 }
 0x25f   : > { %1845 = vst [vmem:[%s3512_s30 + $0x30] sm:$0xff] %v1829_v11  ;;  %v1730_v16 = vadd.f32 %v2263_v9, %v2199_v58 }
 0x260   : > { %v2200_v27 = vpop.f32.mrf.mxu0  ;;  %v2264_v59 = vpop.f32.mrf.mxu1 }
 0x261   : > { %v1830_v46 = vadd.f32 %v3507_v62, %v1730_v16 }
 0x262   : > { %v2201_v60 = vpop.f32.mrf.mxu0  ;;  %v2265_v53 = vpop.f32.mrf.mxu1 }
 0x263   : > { %1846 = vst [vmem:[%s3512_s30 + $0x38] sm:$0xff] %v1830_v46  ;;  %v2202_v47 = vadd.f32 %v2201_v60, %v2200_v27  ;;  %v2266_v25 = vadd.f32 %v2265_v53, %v2264_v59 }
 0x264   : > { %v2203_v39 = vpop.f32.mrf.mxu0  ;;  %v2267_v45 = vpop.f32.mrf.mxu1 }
 0x265   : > { %v1735_v4 = vadd.f32 %v2266_v25, %v2202_v47 }
 0x266   : > { %v2204_v32 = vpop.f32.mrf.mxu0  ;;  %v2268_v54 = vpop.f32.mrf.mxu1 }
 0x267   : > { %v1831_v57 = vadd.f32 %v3507_v62, %v1735_v4  ;;  %v2205_v51 = vadd.f32 %v2204_v32, %v2203_v39  ;;  %v2269_v31 = vadd.f32 %v2268_v54, %v2267_v45 }
 0x268   : > { %v2206_v0 = vpop.f32.mrf.mxu0  ;;  %v2270_v5 = vpop.f32.mrf.mxu1 }
 0x269   : > { %1847 = vst [vmem:[%s3512_s30 + $0x40] sm:$0xff] %v1831_v57  ;;  %v1738_v63 = vadd.f32 %v2269_v31, %v2205_v51 }
 0x26a   : > { %v2207_v3 = vpop.f32.mrf.mxu0  ;;  %v2271_v28 = vpop.f32.mrf.mxu1 }
 0x26b   : > { %v1832_v29 = vadd.f32 %v3507_v62, %v1738_v63  ;;  %v2208_v42 = vadd.f32 %v2207_v3, %v2206_v0  ;;  %v2272_v23 = vadd.f32 %v2271_v28, %v2270_v5 }
 0x26c   : > { %v2209_v33 = vpop.f32.mrf.mxu0  ;;  %v2273_v36 = vpop.f32.mrf.mxu1 }
 0x26d   : > { %1848 = vst [vmem:[%s3512_s30 + $0x48] sm:$0xff] %v1832_v29  ;;  %v1743_v43 = vadd.f32 %v2272_v23, %v2208_v42 }
 0x26e   : > { %v2210_v50 = vpop.f32.mrf.mxu0  ;;  %v2274_v6 = vpop.f32.mrf.mxu1 }
 0x26f   : > { %v1833_v44 = vadd.f32 %v3507_v62, %v1743_v43  ;;  %v2211_v7 = vadd.f32 %v2210_v50, %v2209_v33  ;;  %v2275_v48 = vadd.f32 %v2274_v6, %v2273_v36 }
 0x270   : > { %v2212_v30 = vpop.f32.mrf.mxu0  ;;  %v2276_v52 = vpop.f32.mrf.mxu1 }
 0x271   : > { %1849 = vst [vmem:[%s3512_s30 + $0x50] sm:$0xff] %v1833_v44  ;;  %v1746_v20 = vadd.f32 %v2275_v48, %v2211_v7 }
 0x272   : > { %v2213_v56 = vpop.f32.mrf.mxu0  ;;  %v2277_v49 = vpop.f32.mrf.mxu1 }
 0x273   : > { %v1834_v61 = vadd.f32 %v3507_v62, %v1746_v20  ;;  %v2214_v13 = vadd.f32 %v2213_v56, %v2212_v30  ;;  %v2278_v10 = vadd.f32 %v2277_v49, %v2276_v52 }
 0x274   : > { %v2215_v2 = vpop.f32.mrf.mxu0  ;;  %v2279_v14 = vpop.f32.mrf.mxu1 }
 0x275   : > { %1850 = vst [vmem:[%s3512_s30 + $0x58] sm:$0xff] %v1834_v61  ;;  %v1751_v35 = vadd.f32 %v2278_v10, %v2214_v13 }
 0x276   : > { %v2216_v34 = vpop.f32.mrf.mxu0  ;;  %v2280_v38 = vpop.f32.mrf.mxu1 }
 0x277   : > { %v1835_v12 = vadd.f32 %v3507_v62, %v1751_v35  ;;  %v2217_v8 = vadd.f32 %v2216_v34, %v2215_v2  ;;  %v2281_v37 = vadd.f32 %v2280_v38, %v2279_v14 }
 0x278   : > { %v2218_v22 = vpop.f32.mrf.mxu0  ;;  %v2282_v55 = vpop.f32.mrf.mxu1 }
 0x279   : > { %1851 = vst [vmem:[%s3512_s30 + $0x60] sm:$0xff] %v1835_v12  ;;  %v1754_v26 = vadd.f32 %v2281_v37, %v2217_v8 }
 0x27a   : > { %v2219_v18 = vpop.f32.mrf.mxu0  ;;  %v2283_v24 = vpop.f32.mrf.mxu1 }
 0x27b   : > { %v1836_v17 = vadd.f32 %v3507_v62, %v1754_v26  ;;  %v2220_v41 = vadd.f32 %v2219_v18, %v2218_v22  ;;  %v2284_v21 = vadd.f32 %v2283_v24, %v2282_v55 }
 0x27c   : > { %v2221_v1 = vpop.f32.mrf.mxu0  ;;  %v2285_v15 = vpop.f32.mrf.mxu1 }
 0x27d   : > { %1852 = vst [vmem:[%s3512_s30 + $0x68] sm:$0xff] %v1836_v17  ;;  %v1759_v40 = vadd.f32 %v2284_v21, %v2220_v41 }
 0x27e   : > { %v2222_v58 = vpop.f32.mrf.mxu0  ;;  %v2286_v19 = vpop.f32.mrf.mxu1 }
 0x27f   : > { %v1837_v11 = vadd.f32 %v3507_v62, %v1759_v40  ;;  %v2223_v9 = vadd.f32 %v2222_v58, %v2221_v1  ;;  %v2287_v16 = vadd.f32 %v2286_v19, %v2285_v15 }
 0x281   : > { %1853 = vst [vmem:[%s3512_s30 + $0x70] sm:$0xff] %v1837_v11  ;;  %v1762_v27 = vadd.f32 %v2287_v16, %v2223_v9 }
 0x283   : > { %v1838_v59 = vadd.f32 %v3507_v62, %v1762_v27 }
 0x285   : > { %1854 = vst [vmem:[%s3512_s30 + $0x78] sm:$0xff] %v1838_v59 }
 0x286   : > { %2725 = shalt.err (!%p2722_p13)
}
 0x287   : > { %s2726_s1 = scalar_lea.hbm %s3548_s17, 2048  ;;  %s2730_s26 = scalar_lea.hbm %s3605_s5, 4096 }
 0x288   : > { %p2727_p1 = scmp.ne.s32.totalorder %s3548_s17, %s2726_s1  ;;  %p2731_p12 = scmp.lt.s32.totalorder %s3548_s17, %s3605_s5 }
 0x289   : > { %p2732_p5 = scmp.lt.s32.totalorder %s2730_s26, %s2726_s1 }
 0x28a   : > { %p2728_p4 = pnand %p2727_p1, %p2946_p0 }
 0x28b   : > { %p2733_p3 = por %p2732_p5, %p2731_p12 }
 0x28c   : > { %p2729_p8 = pneg %p2728_p4 }
 0x28e   : > { %p2734_p10 = pnand %p2733_p3, %p2729_p8 }
 0x290   : > { %2737 = shalt.err (!%p2734_p10)
}
 0x291   : > { %s2814_s27 = smov 128   ;;  %s2815_s11 = smov 8  }
 0x292   : > { %2302 = dma.vmem_to_hbm [thread:$0]  (%p2946_p0), %s3550_s10, 2048, %s3548_s17, %s1856_s14, %s2814_s27, %s2814_s27, %s2815_s11  }
 0x293 PF: > { %s1884_s13 = sand.u32 1, %s2780_s18   ;;  %p3623_p2 = scmp.ne.s32.totalorder %s3614_s29, 0 }
 0x294   : > { %p3624_p11 = scmp.ge.s32.totalorder %s2800_s23, 2  ;;  %s1885_s24 = scalar_lea.sflag [#allocation6], %s1884_s13 }
 0x296   : > { %p2319_p7 = pnand %p3624_p11, %p3623_p2 }
 0x298   : > { %p2320_p6 = pneg %p2319_p7 }
 0x29a   : > { %2775 = dma.done.wait (%p2320_p6), %s1885_s24, 2048  }
 0x29b   : > { %2777 = vsyncadd (%p2320_p6), %s1885_s24, 4294965248  ;;  %s23_s23 = sadd.s32 1, %s2800_s23   ;;  %s3625_s18 = smov %s2784_s19 }
 0x29c   : > { %p20_p9 = scmp.ge.s32.totalorder %s23_s23, 4   ;;  %s3626_s19 = smov %s2788_s20 }
 0x29d   : > { %s3627_s20 = smov %s2958_s25  ;;  %s3628_s21 = smov %s2796_s22 }
 0x29e   : > { %s3629_s22 = smov %s3631_s15  ;;  %22 = sbr.rel (!%p20_p9) target bundleno = 10 (0xa), region = 108 }
 0x2a3   :  { %1890 = vsyncpa [#allocation5], 1 }
 0x2a4   :  { %1892 = vsyncpa [#allocation5 + $0x1], 1 }
 0x2a5   :  { %1893 = vsyncpa [#allocation8], 1 }
 0x2a6   :  { %1894 = vsyncpa [#allocation11], 1 }
 0x2a7   :  { %1895 = vsyncpa [#allocation6], 1 }
 0x2a8   :  { %1897 = vsyncpa [#allocation6 + $0x1], 1 }

</bundles_post_ra>
